<compile_context>
chip_gen: v7x
topology: tpu7x:2x2x1
jax: 0.10.0
libtpu: 0.0.40
codegen_flags: <defaults>
</compile_context>

<pallas_src>
import functools

import jax
import jax.numpy as jnp
import numpy as np
from jax import lax
from jax.experimental import pallas as pl
from jax.experimental.pallas import tpu as pltpu


def _round_up(x, m):
    return ((x + m - 1) // m) * m


def _pick_unroll(t_chunk):
    if t_chunk <= 16:
        return t_chunk
    for u in (8, 4, 2):
        if t_chunk % u == 0:
            return u
    return 1


def _lstm_chunk_kernel(maxlen_ref, seqlen_ref, x_ref, wih_ref, whh_ref, b_ref,
                       out_ref, h_scr, c_scr, out_scr, gx_scr,
                       *, nb, hidden, t_chunk, unroll, precision):
    """One (batch block, time chunk) grid step of the LSTM.

    maxlen_ref : SMEM (1,)            int32   max(sequence_lengths)
    seqlen_ref : VMEM (nb, 1)         int32   per-row lengths (0 for padding)
    x_ref      : VMEM (T, nb, C)              this chunk's time-major inputs
    wih_ref    : VMEM (C, 4H)                 W_ih^T, i/f/o columns pre-scaled
    whh_ref    : VMEM (H, 4H)                 W_hh^T, i/f/o columns pre-scaled
    b_ref      : VMEM (1, 4H)                 b_ih + b_hh, i/f/o pre-scaled
    out_ref    : VMEM (nb, H)                 h at t = sequence_length - 1
    h/c/out_scr: VMEM (nb, H)                 carried recurrence state
    gx_scr     : VMEM (T*nb, 4H)              chunk input projection
    """
    H = hidden
    c_idx = pl.program_id(1)             # time-chunk index (sequential)

    @pl.when(c_idx == 0)
    def _init():
        h_scr[...] = jnp.zeros_like(h_scr)
        c_scr[...] = jnp.zeros_like(c_scr)
        out_scr[...] = jnp.zeros_like(out_scr)

    # Skip chunks that start beyond the longest sequence.
    @pl.when(c_idx * t_chunk < maxlen_ref[0])
    def _chunk():
        # Time-parallel half of the FLOPs: one MXU matmul for the whole chunk.
        x2d = x_ref[...].reshape(t_chunk * nb, x_ref.shape[-1])
        gx_scr[...] = (
            jnp.dot(x2d, wih_ref[...], precision=precision,
                    preferred_element_type=jnp.float32)
            + b_ref[...])

        whh = whh_ref[...]                  # loop-invariant (H, 4H)
        seq_last = seqlen_ref[...] - 1      # (nb, 1); padded rows = -1
        t0 = c_idx * t_chunk

        def step(s, carry):
            h, c, out = carry
            row = pl.multiple_of(s * nb, nb)          # nb % 8 == 0
            gates = gx_scr[pl.ds(row, nb), :] + jnp.dot(
                h, whh, precision=precision,
                preferred_element_type=jnp.float32)   # (nb, 4H)
            # One lane-dense tanh + one full-tile affine per step.  i/f/o
            # pre-activations were pre-scaled by 1/2, so
            # sigmoid(z) = 0.5 * tanh(z/2) + 0.5 = 0.5*tg + 0.5 below.
            tg = jnp.tanh(gates)
            sg = 0.5 * tg + 0.5
            i_g = sg[:, 0 * H:1 * H]
            f_g = sg[:, 1 * H:2 * H]
            g_g = tg[:, 2 * H:3 * H]
            o_g = sg[:, 3 * H:4 * H]
            c_new = f_g * c + i_g * g_g
            h_new = o_g * jnp.tanh(c_new)
            # Fused gather: the row whose (length-1) equals this global step
            # takes h_t.  Padded rows (length 0) are never selected.
            out = jnp.where(seq_last == t0 + s, h_new, out)
            return h_new, c_new, out

        h, c, out = lax.fori_loop(
            0, t_chunk, step,
            (h_scr[...], c_scr[...], out_scr[...]),
            unroll=unroll)
        h_scr[...] = h
        c_scr[...] = c
        out_scr[...] = out

    @pl.when(c_idx == pl.num_programs(1) - 1)
    def _finalize():
        out_ref[...] = out_scr[...]


def sequence_embedding_lstm(inputs, sequence_lengths, w_ih, w_hh, b_ih, b_hh,
                            *, batch_block=512, time_chunk=None,
                            chunk_vmem_budget=4 << 20,
                            projection_dtype=jnp.float32,
                            precision=jax.lax.Precision.HIGHEST):
    """inputs: (N, L, C); sequence_lengths: (N,) int32 with values in [1, L].

    w_ih: (4H, C), w_hh: (4H, H), b_ih/b_hh: (4H,)  (PyTorch nn.LSTM layout).
    Returns (N, H) float32, matching SequenceEmbeddingLSTM.forward.
    Set projection_dtype=jnp.bfloat16 to halve x HBM traffic / MXU passes for
    the input projection (small accuracy loss vs f32 torch).
    """
    N, L, C = inputs.shape
    H = w_hh.shape[1]
    G = 4 * H

    # ---- batch blocking (pad to a sublane multiple; block only when large
    # enough that the MXU rows are already well filled) ----------------------
    nb = min(_round_up(N, 8), _round_up(batch_block, 8))
    n_pad = _round_up(N, nb)
    num_bblocks = n_pad // nb

    # ---- time chunking so VMEM residency is O(T_chunk), not O(L) -----------
    x_itemsize = np.dtype(projection_dtype).itemsize
    if time_chunk is None:
        bytes_per_step = nb * (G * 4 + 2 * C * x_itemsize)
        t_chunk = int(max(1, min(L, chunk_vmem_budget // max(1, bytes_per_step))))
        if t_chunk > 16:
            t_chunk = max(16, (t_chunk // 8) * 8)
    else:
        t_chunk = int(max(1, min(L, time_chunk)))
    L_pad = _round_up(L, t_chunk)
    num_chunks = L_pad // t_chunk
    unroll = _pick_unroll(t_chunk)

    # ---- host-side layout prep ---------------------------------------------
    x = inputs.astype(jnp.float32)
    seq = sequence_lengths.astype(jnp.int32)
    if n_pad != N:
        x = jnp.pad(x, ((0, n_pad - N), (0, 0), (0, 0)))
        seq = jnp.pad(seq, (0, n_pad - N))     # padded rows: length 0
    x_tm = jnp.transpose(x, (1, 0, 2))         # (L, n_pad, C) time-major
    if L_pad != L:
        x_tm = jnp.pad(x_tm, ((0, L_pad - L), (0, 0), (0, 0)))
    x_tm = x_tm.astype(projection_dtype)

    # Fold the 1/2 of sigmoid(z) = 0.5*tanh(z/2)+0.5 into the i/f/o columns
    # (gate order i, f, g, o) so the kernel needs one tanh per step.
    col_scale = jnp.concatenate([
        jnp.full((2 * H,), 0.5, jnp.float32),      # i, f
        jnp.ones((H,), jnp.float32),               # g
        jnp.full((H,), 0.5, jnp.float32),          # o
    ])
    wih_t = (jnp.transpose(w_ih).astype(jnp.float32)
             * col_scale).astype(projection_dtype)               # (C, 4H)
    whh_t = jnp.transpose(w_hh).astype(jnp.float32) * col_scale  # (H, 4H)
    bias = ((b_ih + b_hh).astype(jnp.float32) * col_scale).reshape(1, G)

    seq_2d = seq.reshape(n_pad, 1)
    max_len = jnp.max(seq).astype(jnp.int32).reshape(1)          # SMEM scalar

    # ---- VMEM budget (v5e scoped default is only 16 MiB; v7x physical 64) --
    vmem_est = (
        2 * t_chunk * nb * C * x_itemsize        # pipelined x chunk (2 bufs)
        + t_chunk * nb * G * 4                   # gx scratch
        + 2 * (C * G * x_itemsize + H * G * 4 + G * 4)   # weights + bias
        + 2 * nb * 4                             # sequence-length block
        + 2 * nb * H * 4                         # out block
        + 3 * nb * H * 4)                        # h / c / out scratch
    vmem_limit = int(min(64 << 20, max(32 << 20, 2 * vmem_est)))

    kernel = functools.partial(
        _lstm_chunk_kernel, nb=nb, hidden=H, t_chunk=t_chunk, unroll=unroll,
        precision=precision)

    out = pl.pallas_call(
        kernel,
        out_shape=jax.ShapeDtypeStruct((n_pad, H), jnp.float32),
        grid_spec=pltpu.PrefetchScalarGridSpec(
            num_scalar_prefetch=0,
            grid=(num_bblocks, num_chunks),
            in_specs=[
                pl.BlockSpec(memory_space=pltpu.MemorySpace.SMEM),     # max_len
                pl.BlockSpec((nb, 1), lambda b, c: (b, 0)),            # lengths
                pl.BlockSpec((t_chunk, nb, C), lambda b, c: (c, b, 0)),  # x
                pl.BlockSpec((C, G), lambda b, c: (0, 0)),             # W_ih^T
                pl.BlockSpec((H, G), lambda b, c: (0, 0)),             # W_hh^T
                pl.BlockSpec((1, G), lambda b, c: (0, 0)),             # bias
            ],
            out_specs=pl.BlockSpec((nb, H), lambda b, c: (b, 0)),
            scratch_shapes=[
                pltpu.VMEM((nb, H), jnp.float32),            # h
                pltpu.VMEM((nb, H), jnp.float32),            # c
                pltpu.VMEM((nb, H), jnp.float32),            # gathered out
                pltpu.VMEM((t_chunk * nb, G), jnp.float32),  # gx chunk
            ]),
        compiler_params=pltpu.CompilerParams(
            dimension_semantics=("parallel", "arbitrary"),
            vmem_limit_bytes=vmem_limit),
    )(max_len, seq_2d, x_tm, wih_t, whh_t, bias)
    return out[:N]


def _reference_lstm(inputs, sequence_lengths, w_ih, w_hh, b_ih, b_hh):
    """Pure-JAX reference matching torch.nn.LSTM (single layer, f32)."""
    N, L, C = inputs.shape
    H = w_hh.shape[1]
    x_tnc = jnp.transpose(inputs, (1, 0, 2))
    bias = b_ih + b_hh
    prec = jax.lax.Precision.HIGHEST

    def step(carry, x_t):
        h, c = carry
        gates = (jnp.dot(x_t, w_ih.T, precision=prec)
                 + jnp.dot(h, w_hh.T, precision=prec) + bias)
        i = jax.nn.sigmoid(gates[:, 0 * H:1 * H])
        f = jax.nn.sigmoid(gates[:, 1 * H:2 * H])
        g = jnp.tanh(gates[:, 2 * H:3 * H])
        o = jax.nn.sigmoid(gates[:, 3 * H:4 * H])
        c = f * c + i * g
        h = o * jnp.tanh(c)
        return (h, c), h

    init = (jnp.zeros((N, H), jnp.float32), jnp.zeros((N, H), jnp.float32))
    _, outs = jax.lax.scan(step, init, x_tnc)      # (L, N, H)
    return outs[sequence_lengths - 1, jnp.arange(N)]


if __name__ == "__main__":
    # Shapes consistent with the module defaults: n_input_features=16,
    # n_lstm_blocks (hidden)=32, n_layers=1; batch=8 sequences of 8 positions.
    N, L, C, H = 8, 8, 16, 32

    key = jax.random.PRNGKey(0)
    k_x, k_len, k_wih, k_whh, k_bih, k_bhh = jax.random.split(key, 6)

    inputs = jax.random.normal(k_x, (N, L, C), dtype=jnp.float32)
    sequence_lengths = jax.random.randint(k_len, (N,), 1, L + 1, dtype=jnp.int32)

    # PyTorch default init: U(-1/sqrt(H), 1/sqrt(H)).
    bound = 1.0 / np.sqrt(H)
    w_ih = jax.random.uniform(k_wih, (4 * H, C), jnp.float32, -bound, bound)
    w_hh = jax.random.uniform(k_whh, (4 * H, H), jnp.float32, -bound, bound)
    b_ih = jax.random.uniform(k_bih, (4 * H,), jnp.float32, -bound, bound)
    b_hh = jax.random.uniform(k_bhh, (4 * H,), jnp.float32, -bound, bound)

    out = jax.block_until_ready(
        sequence_embedding_lstm(inputs, sequence_lengths,
                                w_ih, w_hh, b_ih, b_hh))
    ref = jax.block_until_ready(
        _reference_lstm(inputs, sequence_lengths, w_ih, w_hh, b_ih, b_hh))
    np.testing.assert_allclose(np.asarray(out), np.asarray(ref),
                               rtol=1e-4, atol=1e-5)

    # Second config: exercises multiple time chunks (pipelined x DMA), multiple
    # batch blocks on the parallel grid axis, and batch/time padding.
    N2, L2 = 20, 11
    k2a, k2b = jax.random.split(jax.random.PRNGKey(1), 2)
    inputs2 = jax.random.normal(k2a, (N2, L2, C), dtype=jnp.float32)
    seq2 = jax.random.randint(k2b, (N2,), 1, L2 + 1, dtype=jnp.int32)
    out2 = jax.block_until_ready(
        sequence_embedding_lstm(inputs2, seq2, w_ih, w_hh, b_ih, b_hh,
                                time_chunk=4, batch_block=8))
    ref2 = jax.block_until_ready(
        _reference_lstm(inputs2, seq2, w_ih, w_hh, b_ih, b_hh))
    np.testing.assert_allclose(np.asarray(out2), np.asarray(ref2),
                               rtol=1e-4, atol=1e-5)

    print("KERNEL_OK")
</pallas_src>

<mosaic_0001>
module attributes {stable_mosaic.version = 11 : i64} {
  func.func @_lstm_chunk_kernel(%arg0: i32, %arg1: i32, %arg2: memref<1xi32, #tpu.memory_space<smem>>, %arg3: memref<8x1xi32, #tpu.memory_space<vmem>>, %arg4: memref<8x8x16xf32, #tpu.memory_space<vmem>>, %arg5: memref<16x128xf32, #tpu.memory_space<vmem>>, %arg6: memref<32x128xf32, #tpu.memory_space<vmem>>, %arg7: memref<1x128xf32, #tpu.memory_space<vmem>>, %arg8: memref<8x32xf32, #tpu.memory_space<vmem>>, %arg9: memref<8x32xf32, #tpu.memory_space<vmem>>, %arg10: memref<8x32xf32, #tpu.memory_space<vmem>>, %arg11: memref<8x32xf32, #tpu.memory_space<vmem>>, %arg12: memref<64x128xf32, #tpu.memory_space<vmem>>) attributes {dimension_semantics = [#tpu.dimension_semantics<parallel>, #tpu.dimension_semantics<arbitrary>], iteration_bounds = array<i64: 1, 1>, scalar_prefetch = 0 : i64, scratch_operands = 4 : i64, tpu.core_type = #tpu.core_type<tc>, window_params = [{transform_indices = @transform_0, window_bounds = array<i64: 1>}, {transform_indices = @transform_1, window_bounds = array<i64: 8, 1>}, {transform_indices = @transform_2, window_bounds = array<i64: 8, 8, 16>}, {pipeline_mode = #tpu.pipeline_mode<synchronous>, transform_indices = @transform_3, window_bounds = array<i64: 16, 128>}, {pipeline_mode = #tpu.pipeline_mode<synchronous>, transform_indices = @transform_4, window_bounds = array<i64: 32, 128>}, {pipeline_mode = #tpu.pipeline_mode<synchronous>, transform_indices = @transform_5, window_bounds = array<i64: 1, 128>}, {transform_indices = @transform_6, window_bounds = array<i64: 8, 32>}]} {
    %c0_i32 = arith.constant 0 : i32
    %0 = arith.cmpi eq, %arg1, %c0_i32 : i32
    %1 = arith.extui %0 : i1 to i32
    %c0_i32_0 = arith.constant 0 : i32
    %2 = arith.cmpi ne, %1, %c0_i32_0 : i32
    scf.if %2 {
      %cst = arith.constant 0.000000e+00 : f32
      %11 = vector.broadcast %cst : f32 to vector<8x32xf32>
      %c0_4 = arith.constant 0 : index
      %c0_5 = arith.constant 0 : index
      %12 = vector.load %arg9[%c0_4, %c0_5] : memref<8x32xf32, #tpu.memory_space<vmem>>, vector<8x32xf32>
      tpu.vector_store %arg9[%c0_4, %c0_5], %11 {strides = array<i32>} : memref<8x32xf32, #tpu.memory_space<vmem>>, vector<8x32xf32>,
      %cst_6 = arith.constant 0.000000e+00 : f32
      %13 = vector.broadcast %cst_6 : f32 to vector<8x32xf32>
      %c0_7 = arith.constant 0 : index
      %c0_8 = arith.constant 0 : index
      %14 = vector.load %arg10[%c0_7, %c0_8] : memref<8x32xf32, #tpu.memory_space<vmem>>, vector<8x32xf32>
      tpu.vector_store %arg10[%c0_7, %c0_8], %13 {strides = array<i32>} : memref<8x32xf32, #tpu.memory_space<vmem>>, vector<8x32xf32>,
      %cst_9 = arith.constant 0.000000e+00 : f32
      %15 = vector.broadcast %cst_9 : f32 to vector<8x32xf32>
      %c0_10 = arith.constant 0 : index
      %c0_11 = arith.constant 0 : index
      %16 = vector.load %arg11[%c0_10, %c0_11] : memref<8x32xf32, #tpu.memory_space<vmem>>, vector<8x32xf32>
      tpu.vector_store %arg11[%c0_10, %c0_11], %15 {strides = array<i32>} : memref<8x32xf32, #tpu.memory_space<vmem>>, vector<8x32xf32>,
    } else {
    }
    %c8_i32 = arith.constant 8 : i32
    %3 = arith.muli %arg1, %c8_i32 : i32
    %c0 = arith.constant 0 : index
    %4 = memref.load %arg2[%c0] : memref<1xi32, #tpu.memory_space<smem>>
    %5 = arith.cmpi slt, %3, %4 : i32
    %6 = arith.extui %5 : i1 to i32
    %c0_i32_1 = arith.constant 0 : i32
    %7 = arith.cmpi ne, %6, %c0_i32_1 : i32
    scf.if %7 {
      %c0_4 = arith.constant 0 : index
      %c0_5 = arith.constant 0 : index
      %c0_6 = arith.constant 0 : index
      %11 = vector.load %arg4[%c0_4, %c0_5, %c0_6] : memref<8x8x16xf32, #tpu.memory_space<vmem>>, vector<8x8x16xf32>
      %12 = vector.shape_cast %11 : vector<8x8x16xf32> to vector<64x16xf32>
      %c0_7 = arith.constant 0 : index
      %c0_8 = arith.constant 0 : index
      %13 = vector.load %arg5[%c0_7, %c0_8] : memref<16x128xf32, #tpu.memory_space<vmem>>, vector<16x128xf32>
      %cst = arith.constant dense<0.000000e+00> : vector<64x128xf32>
      %14 = tpu.matmul %12, %13, %cst {dimension_numbers = #tpu.dot_dimension_numbers<[1], [0], [0], [1], [0, 0, 1, 1], [], []>, precision = #tpu.contract_precision<fp32>} : vector<64x16xf32>, vector<16x128xf32>, vector<64x128xf32> -> vector<64x128xf32>
      %c0_9 = arith.constant 0 : index
      %c0_10 = arith.constant 0 : index
      %15 = vector.load %arg7[%c0_9, %c0_10] : memref<1x128xf32, #tpu.memory_space<vmem>>, vector<1x128xf32>
      %16 = vector.broadcast %15 : vector<1x128xf32> to vector<64x128xf32>
      %17 = arith.addf %14, %16 : vector<64x128xf32>
      %c0_11 = arith.constant 0 : index
      %c0_12 = arith.constant 0 : index
      %18 = vector.load %arg12[%c0_11, %c0_12] : memref<64x128xf32, #tpu.memory_space<vmem>>, vector<64x128xf32>
      tpu.vector_store %arg12[%c0_11, %c0_12], %17 {strides = array<i32>} : memref<64x128xf32, #tpu.memory_space<vmem>>, vector<64x128xf32>,
      %c0_13 = arith.constant 0 : index
      %c0_14 = arith.constant 0 : index
      %19 = vector.load %arg6[%c0_13, %c0_14] : memref<32x128xf32, #tpu.memory_space<vmem>>, vector<32x128xf32>
      %c0_15 = arith.constant 0 : index
      %c0_16 = arith.constant 0 : index
      %20 = vector.load %arg3[%c0_15, %c0_16] : memref<8x1xi32, #tpu.memory_space<vmem>>, vector<8x1xi32>
      %c1_i32 = arith.constant 1 : i32
      %21 = vector.broadcast %c1_i32 : i32 to vector<8x1xi32>
      %22 = arith.subi %20, %21 : vector<8x1xi32>
      %c8_i32_17 = arith.constant 8 : i32
      %23 = arith.muli %arg1, %c8_i32_17 : i32
      %c0_18 = arith.constant 0 : index
      %c0_19 = arith.constant 0 : index
      %24 = vector.load %arg9[%c0_18, %c0_19] : memref<8x32xf32, #tpu.memory_space<vmem>>, vector<8x32xf32>
      %c0_20 = arith.constant 0 : index
      %c0_21 = arith.constant 0 : index
      %25 = vector.load %arg10[%c0_20, %c0_21] : memref<8x32xf32, #tpu.memory_space<vmem>>, vector<8x32xf32>
      %c0_22 = arith.constant 0 : index
      %c0_23 = arith.constant 0 : index
      %26 = vector.load %arg11[%c0_22, %c0_23] : memref<8x32xf32, #tpu.memory_space<vmem>>, vector<8x32xf32>
      %c0_i32_24 = arith.constant 0 : i32
      %c8_i32_25 = arith.constant 8 : i32
      %27 = arith.muli %c0_i32_24, %c8_i32_25 : i32
      %28 = tpu.assume_multiple %27, 8 : i32
      %29 = arith.index_cast %28 : i32 to index
      %c0_26 = arith.constant 0 : index
      %30 = vector.load %arg12[%29, %c0_26] : memref<64x128xf32, #tpu.memory_space<vmem>>, vector<8x128xf32>
      %cst_27 = arith.constant dense<0.000000e+00> : vector<8x128xf32>
      %31 = tpu.matmul %24, %19, %cst_27 {dimension_numbers = #tpu.dot_dimension_numbers<[1], [0], [0], [1], [0, 0, 1, 1], [], []>, precision = #tpu.contract_precision<fp32>} : vector<8x32xf32>, vector<32x128xf32>, vector<8x128xf32> -> vector<8x128xf32>
      %32 = arith.addf %30, %31 : vector<8x128xf32>
      %33 = math.tanh %32 : vector<8x128xf32>
      %cst_28 = arith.constant 5.000000e-01 : f32
      %34 = vector.broadcast %cst_28 : f32 to vector<8x128xf32>
      %35 = arith.mulf %34, %33 : vector<8x128xf32>
      %cst_29 = arith.constant 5.000000e-01 : f32
      %36 = vector.broadcast %cst_29 : f32 to vector<8x128xf32>
      %37 = arith.addf %35, %36 : vector<8x128xf32>
      %38 = vector.extract_strided_slice %37 {offsets = [0, 0], sizes = [8, 32], strides = [1, 1]} : vector<8x128xf32> to vector<8x32xf32>
      %39 = vector.extract_strided_slice %37 {offsets = [0, 32], sizes = [8, 32], strides = [1, 1]} : vector<8x128xf32> to vector<8x32xf32>
      %40 = vector.extract_strided_slice %33 {offsets = [0, 64], sizes = [8, 32], strides = [1, 1]} : vector<8x128xf32> to vector<8x32xf32>
      %41 = vector.extract_strided_slice %37 {offsets = [0, 96], sizes = [8, 32], strides = [1, 1]} : vector<8x128xf32> to vector<8x32xf32>
      %42 = arith.mulf %39, %25 : vector<8x32xf32>
      %43 = arith.mulf %38, %40 : vector<8x32xf32>
      %44 = arith.addf %42, %43 : vector<8x32xf32>
      %45 = math.tanh %44 : vector<8x32xf32>
      %46 = arith.mulf %41, %45 : vector<8x32xf32>
      %47 = arith.addi %23, %c0_i32_24 : i32
      %48 = vector.broadcast %47 : i32 to vector<8x1xi32>
      %49 = arith.cmpi eq, %22, %48 : vector<8x1xi32>
      %50 = vector.shape_cast %49 : vector<8x1xi1> to vector<8x1xi1>
      %51 = vector.broadcast %50 : vector<8x1xi1> to vector<8x32xi1>
      %52 = arith.select %51, %46, %26 : vector<8x32xi1>, vector<8x32xf32>
      %c1_i32_30 = arith.constant 1 : i32
      %c8_i32_31 = arith.constant 8 : i32
      %53 = arith.muli %c1_i32_30, %c8_i32_31 : i32
      %54 = tpu.assume_multiple %53, 8 : i32
      %55 = arith.index_cast %54 : i32 to index
      %c0_32 = arith.constant 0 : index
      %56 = vector.load %arg12[%55, %c0_32] : memref<64x128xf32, #tpu.memory_space<vmem>>, vector<8x128xf32>
      %cst_33 = arith.constant dense<0.000000e+00> : vector<8x128xf32>
      %57 = tpu.matmul %46, %19, %cst_33 {dimension_numbers = #tpu.dot_dimension_numbers<[1], [0], [0], [1], [0, 0, 1, 1], [], []>, precision = #tpu.contract_precision<fp32>} : vector<8x32xf32>, vector<32x128xf32>, vector<8x128xf32> -> vector<8x128xf32>
      %58 = arith.addf %56, %57 : vector<8x128xf32>
      %59 = math.tanh %58 : vector<8x128xf32>
      %cst_34 = arith.constant 5.000000e-01 : f32
      %60 = vector.broadcast %cst_34 : f32 to vector<8x128xf32>
      %61 = arith.mulf %60, %59 : vector<8x128xf32>
      %cst_35 = arith.constant 5.000000e-01 : f32
      %62 = vector.broadcast %cst_35 : f32 to vector<8x128xf32>
      %63 = arith.addf %61, %62 : vector<8x128xf32>
      %64 = vector.extract_strided_slice %63 {offsets = [0, 0], sizes = [8, 32], strides = [1, 1]} : vector<8x128xf32> to vector<8x32xf32>
      %65 = vector.extract_strided_slice %63 {offsets = [0, 32], sizes = [8, 32], strides = [1, 1]} : vector<8x128xf32> to vector<8x32xf32>
      %66 = vector.extract_strided_slice %59 {offsets = [0, 64], sizes = [8, 32], strides = [1, 1]} : vector<8x128xf32> to vector<8x32xf32>
      %67 = vector.extract_strided_slice %63 {offsets = [0, 96], sizes = [8, 32], strides = [1, 1]} : vector<8x128xf32> to vector<8x32xf32>
      %68 = arith.mulf %65, %44 : vector<8x32xf32>
      %69 = arith.mulf %64, %66 : vector<8x32xf32>
      %70 = arith.addf %68, %69 : vector<8x32xf32>
      %71 = math.tanh %70 : vector<8x32xf32>
      %72 = arith.mulf %67, %71 : vector<8x32xf32>
      %73 = arith.addi %23, %c1_i32_30 : i32
      %74 = vector.broadcast %73 : i32 to vector<8x1xi32>
      %75 = arith.cmpi eq, %22, %74 : vector<8x1xi32>
      %76 = vector.shape_cast %75 : vector<8x1xi1> to vector<8x1xi1>
      %77 = vector.broadcast %76 : vector<8x1xi1> to vector<8x32xi1>
      %78 = arith.select %77, %72, %52 : vector<8x32xi1>, vector<8x32xf32>
      %c2_i32 = arith.constant 2 : i32
      %c8_i32_36 = arith.constant 8 : i32
      %79 = arith.muli %c2_i32, %c8_i32_36 : i32
      %80 = tpu.assume_multiple %79, 8 : i32
      %81 = arith.index_cast %80 : i32 to index
      %c0_37 = arith.constant 0 : index
      %82 = vector.load %arg12[%81, %c0_37] : memref<64x128xf32, #tpu.memory_space<vmem>>, vector<8x128xf32>
      %cst_38 = arith.constant dense<0.000000e+00> : vector<8x128xf32>
      %83 = tpu.matmul %72, %19, %cst_38 {dimension_numbers = #tpu.dot_dimension_numbers<[1], [0], [0], [1], [0, 0, 1, 1], [], []>, precision = #tpu.contract_precision<fp32>} : vector<8x32xf32>, vector<32x128xf32>, vector<8x128xf32> -> vector<8x128xf32>
      %84 = arith.addf %82, %83 : vector<8x128xf32>
      %85 = math.tanh %84 : vector<8x128xf32>
      %cst_39 = arith.constant 5.000000e-01 : f32
      %86 = vector.broadcast %cst_39 : f32 to vector<8x128xf32>
      %87 = arith.mulf %86, %85 : vector<8x128xf32>
      %cst_40 = arith.constant 5.000000e-01 : f32
      %88 = vector.broadcast %cst_40 : f32 to vector<8x128xf32>
      %89 = arith.addf %87, %88 : vector<8x128xf32>
      %90 = vector.extract_strided_slice %89 {offsets = [0, 0], sizes = [8, 32], strides = [1, 1]} : vector<8x128xf32> to vector<8x32xf32>
      %91 = vector.extract_strided_slice %89 {offsets = [0, 32], sizes = [8, 32], strides = [1, 1]} : vector<8x128xf32> to vector<8x32xf32>
      %92 = vector.extract_strided_slice %85 {offsets = [0, 64], sizes = [8, 32], strides = [1, 1]} : vector<8x128xf32> to vector<8x32xf32>
      %93 = vector.extract_strided_slice %89 {offsets = [0, 96], sizes = [8, 32], strides = [1, 1]} : vector<8x128xf32> to vector<8x32xf32>
      %94 = arith.mulf %91, %70 : vector<8x32xf32>
      %95 = arith.mulf %90, %92 : vector<8x32xf32>
      %96 = arith.addf %94, %95 : vector<8x32xf32>
      %97 = math.tanh %96 : vector<8x32xf32>
      %98 = arith.mulf %93, %97 : vector<8x32xf32>
      %99 = arith.addi %23, %c2_i32 : i32
      %100 = vector.broadcast %99 : i32 to vector<8x1xi32>
      %101 = arith.cmpi eq, %22, %100 : vector<8x1xi32>
      %102 = vector.shape_cast %101 : vector<8x1xi1> to vector<8x1xi1>
      %103 = vector.broadcast %102 : vector<8x1xi1> to vector<8x32xi1>
      %104 = arith.select %103, %98, %78 : vector<8x32xi1>, vector<8x32xf32>
      %c3_i32 = arith.constant 3 : i32
      %c8_i32_41 = arith.constant 8 : i32
      %105 = arith.muli %c3_i32, %c8_i32_41 : i32
      %106 = tpu.assume_multiple %105, 8 : i32
      %107 = arith.index_cast %106 : i32 to index
      %c0_42 = arith.constant 0 : index
      %108 = vector.load %arg12[%107, %c0_42] : memref<64x128xf32, #tpu.memory_space<vmem>>, vector<8x128xf32>
      %cst_43 = arith.constant dense<0.000000e+00> : vector<8x128xf32>
      %109 = tpu.matmul %98, %19, %cst_43 {dimension_numbers = #tpu.dot_dimension_numbers<[1], [0], [0], [1], [0, 0, 1, 1], [], []>, precision = #tpu.contract_precision<fp32>} : vector<8x32xf32>, vector<32x128xf32>, vector<8x128xf32> -> vector<8x128xf32>
      %110 = arith.addf %108, %109 : vector<8x128xf32>
      %111 = math.tanh %110 : vector<8x128xf32>
      %cst_44 = arith.constant 5.000000e-01 : f32
      %112 = vector.broadcast %cst_44 : f32 to vector<8x128xf32>
      %113 = arith.mulf %112, %111 : vector<8x128xf32>
      %cst_45 = arith.constant 5.000000e-01 : f32
      %114 = vector.broadcast %cst_45 : f32 to vector<8x128xf32>
      %115 = arith.addf %113, %114 : vector<8x128xf32>
      %116 = vector.extract_strided_slice %115 {offsets = [0, 0], sizes = [8, 32], strides = [1, 1]} : vector<8x128xf32> to vector<8x32xf32>
      %117 = vector.extract_strided_slice %115 {offsets = [0, 32], sizes = [8, 32], strides = [1, 1]} : vector<8x128xf32> to vector<8x32xf32>
      %118 = vector.extract_strided_slice %111 {offsets = [0, 64], sizes = [8, 32], strides = [1, 1]} : vector<8x128xf32> to vector<8x32xf32>
      %119 = vector.extract_strided_slice %115 {offsets = [0, 96], sizes = [8, 32], strides = [1, 1]} : vector<8x128xf32> to vector<8x32xf32>
      %120 = arith.mulf %117, %96 : vector<8x32xf32>
      %121 = arith.mulf %116, %118 : vector<8x32xf32>
      %122 = arith.addf %120, %121 : vector<8x32xf32>
      %123 = math.tanh %122 : vector<8x32xf32>
      %124 = arith.mulf %119, %123 : vector<8x32xf32>
      %125 = arith.addi %23, %c3_i32 : i32
      %126 = vector.broadcast %125 : i32 to vector<8x1xi32>
      %127 = arith.cmpi eq, %22, %126 : vector<8x1xi32>
      %128 = vector.shape_cast %127 : vector<8x1xi1> to vector<8x1xi1>
      %129 = vector.broadcast %128 : vector<8x1xi1> to vector<8x32xi1>
      %130 = arith.select %129, %124, %104 : vector<8x32xi1>, vector<8x32xf32>
      %c4_i32 = arith.constant 4 : i32
      %c8_i32_46 = arith.constant 8 : i32
      %131 = arith.muli %c4_i32, %c8_i32_46 : i32
      %132 = tpu.assume_multiple %131, 8 : i32
      %133 = arith.index_cast %132 : i32 to index
      %c0_47 = arith.constant 0 : index
      %134 = vector.load %arg12[%133, %c0_47] : memref<64x128xf32, #tpu.memory_space<vmem>>, vector<8x128xf32>
      %cst_48 = arith.constant dense<0.000000e+00> : vector<8x128xf32>
      %135 = tpu.matmul %124, %19, %cst_48 {dimension_numbers = #tpu.dot_dimension_numbers<[1], [0], [0], [1], [0, 0, 1, 1], [], []>, precision = #tpu.contract_precision<fp32>} : vector<8x32xf32>, vector<32x128xf32>, vector<8x128xf32> -> vector<8x128xf32>
      %136 = arith.addf %134, %135 : vector<8x128xf32>
      %137 = math.tanh %136 : vector<8x128xf32>
      %cst_49 = arith.constant 5.000000e-01 : f32
      %138 = vector.broadcast %cst_49 : f32 to vector<8x128xf32>
      %139 = arith.mulf %138, %137 : vector<8x128xf32>
      %cst_50 = arith.constant 5.000000e-01 : f32
      %140 = vector.broadcast %cst_50 : f32 to vector<8x128xf32>
      %141 = arith.addf %139, %140 : vector<8x128xf32>
      %142 = vector.extract_strided_slice %141 {offsets = [0, 0], sizes = [8, 32], strides = [1, 1]} : vector<8x128xf32> to vector<8x32xf32>
      %143 = vector.extract_strided_slice %141 {offsets = [0, 32], sizes = [8, 32], strides = [1, 1]} : vector<8x128xf32> to vector<8x32xf32>
      %144 = vector.extract_strided_slice %137 {offsets = [0, 64], sizes = [8, 32], strides = [1, 1]} : vector<8x128xf32> to vector<8x32xf32>
      %145 = vector.extract_strided_slice %141 {offsets = [0, 96], sizes = [8, 32], strides = [1, 1]} : vector<8x128xf32> to vector<8x32xf32>
      %146 = arith.mulf %143, %122 : vector<8x32xf32>
      %147 = arith.mulf %142, %144 : vector<8x32xf32>
      %148 = arith.addf %146, %147 : vector<8x32xf32>
      %149 = math.tanh %148 : vector<8x32xf32>
      %150 = arith.mulf %145, %149 : vector<8x32xf32>
      %151 = arith.addi %23, %c4_i32 : i32
      %152 = vector.broadcast %151 : i32 to vector<8x1xi32>
      %153 = arith.cmpi eq, %22, %152 : vector<8x1xi32>
      %154 = vector.shape_cast %153 : vector<8x1xi1> to vector<8x1xi1>
      %155 = vector.broadcast %154 : vector<8x1xi1> to vector<8x32xi1>
      %156 = arith.select %155, %150, %130 : vector<8x32xi1>, vector<8x32xf32>
      %c5_i32 = arith.constant 5 : i32
      %c8_i32_51 = arith.constant 8 : i32
      %157 = arith.muli %c5_i32, %c8_i32_51 : i32
      %158 = tpu.assume_multiple %157, 8 : i32
      %159 = arith.index_cast %158 : i32 to index
      %c0_52 = arith.constant 0 : index
      %160 = vector.load %arg12[%159, %c0_52] : memref<64x128xf32, #tpu.memory_space<vmem>>, vector<8x128xf32>
      %cst_53 = arith.constant dense<0.000000e+00> : vector<8x128xf32>
      %161 = tpu.matmul %150, %19, %cst_53 {dimension_numbers = #tpu.dot_dimension_numbers<[1], [0], [0], [1], [0, 0, 1, 1], [], []>, precision = #tpu.contract_precision<fp32>} : vector<8x32xf32>, vector<32x128xf32>, vector<8x128xf32> -> vector<8x128xf32>
      %162 = arith.addf %160, %161 : vector<8x128xf32>
      %163 = math.tanh %162 : vector<8x128xf32>
      %cst_54 = arith.constant 5.000000e-01 : f32
      %164 = vector.broadcast %cst_54 : f32 to vector<8x128xf32>
      %165 = arith.mulf %164, %163 : vector<8x128xf32>
      %cst_55 = arith.constant 5.000000e-01 : f32
      %166 = vector.broadcast %cst_55 : f32 to vector<8x128xf32>
      %167 = arith.addf %165, %166 : vector<8x128xf32>
      %168 = vector.extract_strided_slice %167 {offsets = [0, 0], sizes = [8, 32], strides = [1, 1]} : vector<8x128xf32> to vector<8x32xf32>
      %169 = vector.extract_strided_slice %167 {offsets = [0, 32], sizes = [8, 32], strides = [1, 1]} : vector<8x128xf32> to vector<8x32xf32>
      %170 = vector.extract_strided_slice %163 {offsets = [0, 64], sizes = [8, 32], strides = [1, 1]} : vector<8x128xf32> to vector<8x32xf32>
      %171 = vector.extract_strided_slice %167 {offsets = [0, 96], sizes = [8, 32], strides = [1, 1]} : vector<8x128xf32> to vector<8x32xf32>
      %172 = arith.mulf %169, %148 : vector<8x32xf32>
      %173 = arith.mulf %168, %170 : vector<8x32xf32>
      %174 = arith.addf %172, %173 : vector<8x32xf32>
      %175 = math.tanh %174 : vector<8x32xf32>
      %176 = arith.mulf %171, %175 : vector<8x32xf32>
      %177 = arith.addi %23, %c5_i32 : i32
      %178 = vector.broadcast %177 : i32 to vector<8x1xi32>
      %179 = arith.cmpi eq, %22, %178 : vector<8x1xi32>
      %180 = vector.shape_cast %179 : vector<8x1xi1> to vector<8x1xi1>
      %181 = vector.broadcast %180 : vector<8x1xi1> to vector<8x32xi1>
      %182 = arith.select %181, %176, %156 : vector<8x32xi1>, vector<8x32xf32>
      %c6_i32 = arith.constant 6 : i32
      %c8_i32_56 = arith.constant 8 : i32
      %183 = arith.muli %c6_i32, %c8_i32_56 : i32
      %184 = tpu.assume_multiple %183, 8 : i32
      %185 = arith.index_cast %184 : i32 to index
      %c0_57 = arith.constant 0 : index
      %186 = vector.load %arg12[%185, %c0_57] : memref<64x128xf32, #tpu.memory_space<vmem>>, vector<8x128xf32>
      %cst_58 = arith.constant dense<0.000000e+00> : vector<8x128xf32>
      %187 = tpu.matmul %176, %19, %cst_58 {dimension_numbers = #tpu.dot_dimension_numbers<[1], [0], [0], [1], [0, 0, 1, 1], [], []>, precision = #tpu.contract_precision<fp32>} : vector<8x32xf32>, vector<32x128xf32>, vector<8x128xf32> -> vector<8x128xf32>
      %188 = arith.addf %186, %187 : vector<8x128xf32>
      %189 = math.tanh %188 : vector<8x128xf32>
      %cst_59 = arith.constant 5.000000e-01 : f32
      %190 = vector.broadcast %cst_59 : f32 to vector<8x128xf32>
      %191 = arith.mulf %190, %189 : vector<8x128xf32>
      %cst_60 = arith.constant 5.000000e-01 : f32
      %192 = vector.broadcast %cst_60 : f32 to vector<8x128xf32>
      %193 = arith.addf %191, %192 : vector<8x128xf32>
      %194 = vector.extract_strided_slice %193 {offsets = [0, 0], sizes = [8, 32], strides = [1, 1]} : vector<8x128xf32> to vector<8x32xf32>
      %195 = vector.extract_strided_slice %193 {offsets = [0, 32], sizes = [8, 32], strides = [1, 1]} : vector<8x128xf32> to vector<8x32xf32>
      %196 = vector.extract_strided_slice %189 {offsets = [0, 64], sizes = [8, 32], strides = [1, 1]} : vector<8x128xf32> to vector<8x32xf32>
      %197 = vector.extract_strided_slice %193 {offsets = [0, 96], sizes = [8, 32], strides = [1, 1]} : vector<8x128xf32> to vector<8x32xf32>
      %198 = arith.mulf %195, %174 : vector<8x32xf32>
      %199 = arith.mulf %194, %196 : vector<8x32xf32>
      %200 = arith.addf %198, %199 : vector<8x32xf32>
      %201 = math.tanh %200 : vector<8x32xf32>
      %202 = arith.mulf %197, %201 : vector<8x32xf32>
      %203 = arith.addi %23, %c6_i32 : i32
      %204 = vector.broadcast %203 : i32 to vector<8x1xi32>
      %205 = arith.cmpi eq, %22, %204 : vector<8x1xi32>
      %206 = vector.shape_cast %205 : vector<8x1xi1> to vector<8x1xi1>
      %207 = vector.broadcast %206 : vector<8x1xi1> to vector<8x32xi1>
      %208 = arith.select %207, %202, %182 : vector<8x32xi1>, vector<8x32xf32>
      %c7_i32 = arith.constant 7 : i32
      %c8_i32_61 = arith.constant 8 : i32
      %209 = arith.muli %c7_i32, %c8_i32_61 : i32
      %210 = tpu.assume_multiple %209, 8 : i32
      %211 = arith.index_cast %210 : i32 to index
      %c0_62 = arith.constant 0 : index
      %212 = vector.load %arg12[%211, %c0_62] : memref<64x128xf32, #tpu.memory_space<vmem>>, vector<8x128xf32>
      %cst_63 = arith.constant dense<0.000000e+00> : vector<8x128xf32>
      %213 = tpu.matmul %202, %19, %cst_63 {dimension_numbers = #tpu.dot_dimension_numbers<[1], [0], [0], [1], [0, 0, 1, 1], [], []>, precision = #tpu.contract_precision<fp32>} : vector<8x32xf32>, vector<32x128xf32>, vector<8x128xf32> -> vector<8x128xf32>
      %214 = arith.addf %212, %213 : vector<8x128xf32>
      %215 = math.tanh %214 : vector<8x128xf32>
      %cst_64 = arith.constant 5.000000e-01 : f32
      %216 = vector.broadcast %cst_64 : f32 to vector<8x128xf32>
      %217 = arith.mulf %216, %215 : vector<8x128xf32>
      %cst_65 = arith.constant 5.000000e-01 : f32
      %218 = vector.broadcast %cst_65 : f32 to vector<8x128xf32>
      %219 = arith.addf %217, %218 : vector<8x128xf32>
      %220 = vector.extract_strided_slice %219 {offsets = [0, 0], sizes = [8, 32], strides = [1, 1]} : vector<8x128xf32> to vector<8x32xf32>
      %221 = vector.extract_strided_slice %219 {offsets = [0, 32], sizes = [8, 32], strides = [1, 1]} : vector<8x128xf32> to vector<8x32xf32>
      %222 = vector.extract_strided_slice %215 {offsets = [0, 64], sizes = [8, 32], strides = [1, 1]} : vector<8x128xf32> to vector<8x32xf32>
      %223 = vector.extract_strided_slice %219 {offsets = [0, 96], sizes = [8, 32], strides = [1, 1]} : vector<8x128xf32> to vector<8x32xf32>
      %224 = arith.mulf %221, %200 : vector<8x32xf32>
      %225 = arith.mulf %220, %222 : vector<8x32xf32>
      %226 = arith.addf %224, %225 : vector<8x32xf32>
      %227 = math.tanh %226 : vector<8x32xf32>
      %228 = arith.mulf %223, %227 : vector<8x32xf32>
      %229 = arith.addi %23, %c7_i32 : i32
      %230 = vector.broadcast %229 : i32 to vector<8x1xi32>
      %231 = arith.cmpi eq, %22, %230 : vector<8x1xi32>
      %232 = vector.shape_cast %231 : vector<8x1xi1> to vector<8x1xi1>
      %233 = vector.broadcast %232 : vector<8x1xi1> to vector<8x32xi1>
      %234 = arith.select %233, %228, %208 : vector<8x32xi1>, vector<8x32xf32>
      %c8_i32_66 = arith.constant 8 : i32
      %c0_67 = arith.constant 0 : index
      %c0_68 = arith.constant 0 : index
      %235 = vector.load %arg9[%c0_67, %c0_68] : memref<8x32xf32, #tpu.memory_space<vmem>>, vector<8x32xf32>
      tpu.vector_store %arg9[%c0_67, %c0_68], %228 {strides = array<i32>} : memref<8x32xf32, #tpu.memory_space<vmem>>, vector<8x32xf32>,
      %c0_69 = arith.constant 0 : index
      %c0_70 = arith.constant 0 : index
      %236 = vector.load %arg10[%c0_69, %c0_70] : memref<8x32xf32, #tpu.memory_space<vmem>>, vector<8x32xf32>
      tpu.vector_store %arg10[%c0_69, %c0_70], %226 {strides = array<i32>} : memref<8x32xf32, #tpu.memory_space<vmem>>, vector<8x32xf32>,
      %c0_71 = arith.constant 0 : index
      %c0_72 = arith.constant 0 : index
      %237 = vector.load %arg11[%c0_71, %c0_72] : memref<8x32xf32, #tpu.memory_space<vmem>>, vector<8x32xf32>
      tpu.vector_store %arg11[%c0_71, %c0_72], %234 {strides = array<i32>} : memref<8x32xf32, #tpu.memory_space<vmem>>, vector<8x32xf32>,
    } else {
    }
    %c0_i32_2 = arith.constant 0 : i32
    %8 = arith.cmpi eq, %arg1, %c0_i32_2 : i32
    %9 = arith.extui %8 : i1 to i32
    %c0_i32_3 = arith.constant 0 : i32
    %10 = arith.cmpi ne, %9, %c0_i32_3 : i32
    scf.if %10 {
      %c0_4 = arith.constant 0 : index
      %c0_5 = arith.constant 0 : index
      %11 = vector.load %arg11[%c0_4, %c0_5] : memref<8x32xf32, #tpu.memory_space<vmem>>, vector<8x32xf32>
      %c0_6 = arith.constant 0 : index
      %c0_7 = arith.constant 0 : index
      %12 = vector.load %arg8[%c0_6, %c0_7] : memref<8x32xf32, #tpu.memory_space<vmem>>, vector<8x32xf32>
      tpu.vector_store %arg8[%c0_6, %c0_7], %11 {strides = array<i32>} : memref<8x32xf32, #tpu.memory_space<vmem>>, vector<8x32xf32>,
    } else {
    }
    return
  }
  func.func @transform_0(%arg0: i32, %arg1: i32) -> i32 {
    %c0_i32 = arith.constant 0 : i32
    %c0_i32_0 = arith.constant 0 : i32
    return %c0_i32 : i32
  }
  func.func @transform_1(%arg0: i32, %arg1: i32) -> (i32, i32) {
    %c0_i32 = arith.constant 0 : i32
    %c0_i32_0 = arith.constant 0 : i32
    return %arg0, %c0_i32 : i32, i32
  }
  func.func @transform_2(%arg0: i32, %arg1: i32) -> (i32, i32, i32) {
    %c0_i32 = arith.constant 0 : i32
    %c0_i32_0 = arith.constant 0 : i32
    return %arg1, %arg0, %c0_i32 : i32, i32, i32
  }
  func.func @transform_3(%arg0: i32, %arg1: i32) -> (i32, i32) {
    %c0_i32 = arith.constant 0 : i32
    %c0_i32_0 = arith.constant 0 : i32
    %c0_i32_1 = arith.constant 0 : i32
    return %c0_i32, %c0_i32_0 : i32, i32
  }
  func.func @transform_4(%arg0: i32, %arg1: i32) -> (i32, i32) {
    %c0_i32 = arith.constant 0 : i32
    %c0_i32_0 = arith.constant 0 : i32
    %c0_i32_1 = arith.constant 0 : i32
    return %c0_i32, %c0_i32_0 : i32, i32
  }
  func.func @transform_5(%arg0: i32, %arg1: i32) -> (i32, i32) {
    %c0_i32 = arith.constant 0 : i32
    %c0_i32_0 = arith.constant 0 : i32
    %c0_i32_1 = arith.constant 0 : i32
    return %c0_i32, %c0_i32_0 : i32, i32
  }
  func.func @transform_6(%arg0: i32, %arg1: i32) -> (i32, i32) {
    %c0_i32 = arith.constant 0 : i32
    %c0_i32_0 = arith.constant 0 : i32
    return %arg0, %c0_i32 : i32, i32
  }
}

</mosaic_0001>

<bundles_post_ra>
// kernel: tpu_custom_call.1
= control target key start
LH: loop header
LB: loop body
LE: loop exit
PB: predicated region body
PF: predicated region fallthrough
CT: control target
= control target key end

     0   :  { %12 = vsyncpa [#allocation8], 0  ;;  %s7309_s0 = inlined_call_operand.<no memory space> [shape: s32[1], index: 0, kind: input, shape index: {}]   ;;  %s7310_s1 = inlined_call_operand.vmem [shape: s32[8,1], index: 1, kind: input, shape index: {}]   ;;  %s7311_s2 = inlined_call_operand.hbm [shape: f32[8,8,16], index: 2, kind: input, shape index: {}]   ;;  %s7312_s3 = inlined_call_operand.vmem [shape: f32[16,128], index: 3, kind: input, shape index: {}]   ;;  %s7313_s4 = inlined_call_operand.hbm [shape: f32[32,128], index: 4, kind: input, shape index: {}]   ;;  %s7314_s5 = inlined_call_operand.vmem [shape: f32[1,128], index: 5, kind: input, shape index: {}]   ;;  %s7315_s6 = inlined_call_operand.hbm [shape: f32[8,32], index: 6, kind: output, shape index: {}]  }
   0x1   :  { %13 = vsyncpa [#allocation11], 0 }
   0x2   :  { %14 = vsyncpa [#allocation9], 0  ;;  %s6591_s21 = smov [#allocation7]   ;;  %s6519_s25 = scalar_lea.hbm %s7311_s2, 1024 }
   0x3   :  { %s24_s22 = sshll.u32 %s6591_s21, 4  ;;  %p6520_p0 = scmp.ne.s32.totalorder %s7311_s2, %s6519_s25  ;;  %s25_s22 = int_to_ptr.vmem [resolvable:$true] %s24_s22 }
   0x4   :  { %p6523_p1 = scmp.lt.u32.totalorder %s6519_s25, %s7311_s2 }
   0x6   :  { %p6525_p2 = pnand %p6523_p1, %p6520_p0 }
   0x8   :  { %6528 = shalt.err (!%p6525_p2)
}
   0x9   :  { %s6529_s30 = scalar_lea.vmem %s25_s22, 1024  ;;  %p6534_p4 = scmp.lt.s32.totalorder %s25_s22, %s25_s22 }
   0xa   :  { %p6530_p3 = scmp.ne.s32.totalorder %s25_s22, %s6529_s30  ;;  %p6535_p5 = scmp.lt.s32.totalorder %s6529_s30, %s6529_s30 }
   0xc   :  { %p6536_p6 = por %p6535_p5, %p6534_p4 }
   0xe   :  { %p6537_p7 = pnand %p6536_p6, %p6530_p3 }
  0x10   :  { %6540 = shalt.err (!%p6537_p7)
}
  0x11   :  { %s6592_s7 = smov 128   ;;  %s6593_s8 = smov 8  }
  0x12   :  { %30 = dma.hbm_to_vmem [thread:$0]  %s7311_s2, 1024, %s25_s22, [#allocation8], %s6592_s7, %s6592_s7, %s6593_s8  }
  0x13   :  { %s6594_s11 = smov [#allocation10]   ;;  %s6541_s15 = scalar_lea.hbm %s7313_s4, 512 }
  0x14   :  { %s38_s12 = sshll.u32 %s6594_s11, 4  ;;  %p6542_p8 = scmp.ne.s32.totalorder %s7313_s4, %s6541_s15  ;;  %s39_s12 = int_to_ptr.vmem [resolvable:$true] %s38_s12 }
  0x15   :  { %p6545_p9 = scmp.lt.u32.totalorder %s6541_s15, %s7313_s4 }
  0x17   :  { %p6547_p10 = pnand %p6545_p9, %p6542_p8 }
  0x19   :  { %6550 = shalt.err (!%p6547_p10)
}
  0x1a   :  { %s6551_s20 = scalar_lea.vmem %s39_s12, 512  ;;  %p6556_p12 = scmp.lt.s32.totalorder %s39_s12, %s39_s12 }
  0x1b   :  { %p6552_p11 = scmp.ne.s32.totalorder %s39_s12, %s6551_s20  ;;  %p6557_p13 = scmp.lt.s32.totalorder %s6551_s20, %s6551_s20 }
  0x1d   :  { %p6558_p0 = por %p6557_p13, %p6556_p12 }
  0x1f   :  { %p6559_p1 = pnand %p6558_p0, %p6552_p11 }
  0x21   :  { %6562 = shalt.err (!%p6559_p1)
}
  0x22   :  { %44 = dma.hbm_to_vmem [thread:$0]  %s7313_s4, 512, %s39_s12, [#allocation11], %s6592_s7, %s6592_s7, %s6593_s8  }
  0x23   :  { %6585 = dma.done.wait [#allocation8], 1024  }
  0x24   :  { %6586 = vsyncadd [#allocation8], 4294966272 }
  0x25   :  { %6587 = dma.done.wait [#allocation11], 512  }
  0x26   :  { %6588 = vsyncadd [#allocation11], 4294966784  ;;  %vm57_vm0 = vcmask 261120   ;;  %v6595_v0 = vmov 0.0   ;;  %p5105_p2 = scmp.le.s32.totalorder %s7309_s0, 0 }
  0x27   :  { %58 = vst.msk [vmem:[#allocation2] sm:$0xff] %vm57_vm0, %v6595_v0  ;;  %59 = vst.msk [vmem:[#allocation3] sm:$0xff] %vm57_vm0, %v6595_v0  ;;  %v75_v1 = vld [vmem:[%s7312_s3] sm:$0xff] (!%p5105_p2)  ;;  %v76_v2 = vld [vmem:[%s7312_s3 + $0x8] sm:$0xff] (!%p5105_p2)  ;;  %vm84_vm1 = vcmask (!%p5105_p2), 130048   ;;  %v6596_v4 = vmov (!%p5105_p2), 0.0|0.0  }
  0x28   :  { %60 = vst.msk [vmem:[#allocation4] sm:$0xff] %vm57_vm0, %v6595_v0  ;;  %66 = sbr.rel (%p5105_p2) target bundleno = 6118 (0x17e6), region = 41  ;;  %v877_v3 = vld [vmem:[#allocation10] sm:$0xff] (!%p5105_p2)  ;;  %6056 = vmatprep.subr.bf16.mxu1 (!%p5105_p2), %v6596_v4  ;;  %v110_v5 = vand.u32 (!%p5105_p2), 4294901760, %v75_v1  ;;  %v113_v6 = vand.u32 (!%p5105_p2), 4294901760, %v76_v2  ;;  %v878_v7 = vld [vmem:[#allocation10 + $0x8] sm:$0xff] (!%p5105_p2) }
  0x29   :  { %v892_v8 = vand.u32 (!%p5105_p2), 4294901760, %v877_v3  ;;  %v67_v9 = vld [vmem:[#allocation7] sm:$0xff] (!%p5105_p2)  ;;  %v68_v10 = vld [vmem:[#allocation7 + $0x8] sm:$0xff] (!%p5105_p2)  ;;  %v895_v11 = vand.u32 (!%p5105_p2), 4294901760, %v878_v7  ;;  %v6678_v14 = vld [vmem:[#allocation10 + $0x10] sm:$0xff] (!%p5105_p2)  ;;  %vm6597_vm2 = vmmov (!%p5105_p2), 0  }
  0x2a   :  { %v86_v12 = vsel (!%p5105_p2), %vm84_vm1, %v67_v9, 0  ;;  %v89_v13 = vsel (!%p5105_p2), %vm84_vm1, %v68_v10, 0  ;;  %v6680_v15 = vld [vmem:[#allocation10 + $0x18] sm:$0xff] (!%p5105_p2)  ;;  %v6682_v16 = vpack.c.bf16 (!%p5105_p2), %v113_v6, %v110_v5  ;;  %v6688_v19 = vsub.f32 (!%p5105_p2), %v75_v1, %v110_v5  ;;  %v69_v21 = vld [vmem:[#allocation7 + $0x10] sm:$0xff] (!%p5105_p2)  ;;  %v71_v52 = vld [vmem:[#allocation7 + $0x20] sm:$0xff] (!%p5105_p2)  ;;  %s6600_s27 = smov (!%p5105_p2), 32  }
  0x2b   :  { %v6684_v17 = vand.u32 (!%p5105_p2), 4294901760, %v86_v12  ;;  %v6686_v18 = vand.u32 (!%p5105_p2), 4294901760, %v89_v13  ;;  %v6598_v20 = vmov (!%p5105_p2), 0.0   ;;  %v6692_v23 = vpack.c.bf16 (!%p5105_p2), %v895_v11, %v892_v8  ;;  %v70_v31 = vld [vmem:[#allocation7 + $0x18] sm:$0xff] (!%p5105_p2)  ;;  %v72_v53 = vld [vmem:[#allocation7 + $0x28] sm:$0xff] (!%p5105_p2) }
  0x2c   :  { %5512 = vmatprep.mubr.msk.f32.mxu1 (!%p5105_p2), %vm6597_vm2, %v6598_v20  ;;  %v6694_v24 = vsub.f32 (!%p5105_p2), %v76_v2, %v113_v6  ;;  %v898_v25 = vand.u32 (!%p5105_p2), 4294901760, %v6678_v14  ;;  %v901_v26 = vand.u32 (!%p5105_p2), 4294901760, %v6680_v15  ;;  %6033 = vmatprep.subr.bf16.mxu0 (!%p5105_p2), %v6682_v16  ;;  %v259_v29 = vand.u32 (!%p5105_p2), 4294901760, %v6688_v19  ;;  %v73_v2 = vld [vmem:[#allocation7 + $0x30] sm:$0xff] (!%p5105_p2) }
  0x2d   :  { %v6700_v27 = vsub.f32 (!%p5105_p2), %v86_v12, %v6684_v17  ;;  %v6703_v28 = vsub.f32 (!%p5105_p2), %v89_v13, %v6686_v18  ;;  %v92_v30 = vsel (!%p5105_p2), %vm84_vm1, %v69_v21, 0  ;;  %6058 = vmatpush3.bf16.msra.mxu1 (!%p5105_p2), %v6692_v23  ;;  %6035 = vmatpush3.bf16.msra.mxu0 (!%p5105_p2), %v6682_v16  ;;  %v95_v42 = vsel (!%p5105_p2), %vm84_vm1, %v70_v31, 0  ;;  %v74_v12 = vld [vmem:[#allocation7 + $0x38] sm:$0xff] (!%p5105_p2) }
  0x2e   :  { %v883_v22 = vld [vmem:[#allocation2] sm:$0xff] (!%p5105_p2)  ;;  %v266_v32 = vand.u32 (!%p5105_p2), 4294901760, %v6694_v24  ;;  %v6712_v33 = vpack.c.bf16 (!%p5105_p2), %v901_v26, %v898_v25  ;;  %v6714_v34 = vand.u32 (!%p5105_p2), 4294901760, %v92_v30  ;;  %6059 = vmatprep.subr.bf16.mxu1 (!%p5105_p2), %v6596_v4  ;;  %v260_v38 = vsub.f32 (!%p5105_p2), %v6688_v19, %v259_v29 }
  0x2f   :  { %v889_v35 = vsel %vm57_vm0, %v883_v22, 0  ;;  %v178_v36 = vand.u32 4294901760, %v6700_v27  ;;  %v188_v37 = vand.u32 4294901760, %v6703_v28  ;;  %v6732_v43 = vsub.f32 %v877_v3, %v892_v8 }
  0x30   :  { %v6723_v39 = vand.u32 4294901760, %v889_v35  ;;  %v267_v40 = vsub.f32 %v6694_v24, %v266_v32  ;;  %v6729_v41 = vsub.f32 %v92_v30, %v6714_v34  ;;  %v261_v46 = vand.u32 4294901760, %v260_v38 }
  0x31   :  { %v179_v44 = vsub.f32 %v6700_v27, %v178_v36  ;;  %v189_v45 = vsub.f32 %v6703_v28, %v188_v37  ;;  %6061 = vmatpush3.bf16.msra.mxu1 %v6712_v33  ;;  %v6745_v50 = vand.u32 4294901760, %v95_v42  ;;  %v973_v51 = vand.u32 4294901760, %v6732_v43 }
  0x32   :  { %v6741_v47 = vsub.f32 %v889_v35, %v6723_v39  ;;  %v268_v48 = vand.u32 4294901760, %v267_v40  ;;  %v198_v49 = vand.u32 4294901760, %v6729_v41  ;;  %6062 = vmatprep.subr.bf16.mxu1 %v6596_v4  ;;  %v6750_v57 = vsub.f32 %v878_v7, %v895_v11 }
  0x33   :  { %v180_v54 = vand.u32 4294901760, %v179_v44  ;;  %v190_v55 = vand.u32 4294901760, %v189_v45  ;;  %v6756_v60 = vsub.f32 %v95_v42, %v6745_v50  ;;  %v974_v61 = vsub.f32 %v6732_v43, %v973_v51 }
  0x34   :  { %v962_v56 = vand.u32 4294901760, %v6741_v47  ;;  %v6036_v58 = vpack.c.bf16 %v268_v48, %v261_v46  ;;  %v199_v59 = vsub.f32 %v6729_v41, %v198_v49  ;;  %v980_v63 = vand.u32 4294901760, %v6750_v57 }
  0x35   :  { %5412 = vmatprep.mubr.f32.mxu0 %v180_v54  ;;  %v98_v0 = vsel %vm84_vm1, %v71_v52, 0  ;;  %v101_v1 = vsel %vm84_vm1, %v72_v53, 0  ;;  %v208_v5 = vand.u32 4294901760, %v6756_v60  ;;  %v975_v6 = vand.u32 4294901760, %v974_v61 }
  0x36   :  { %v963_v62 = vsub.f32 %v6741_v47, %v962_v56  ;;  %5413 = vmatmul.mubr.f32.vlgmr.msra.gmra.mrb[0].mxu0 %v190_v55  ;;  %6037 = vmatprep.subr.bf16.mxu0 %v6036_v58  ;;  %v200_v3 = vand.u32 4294901760, %v199_v59  ;;  %v6768_v7 = vand.u32 4294901760, %v98_v0  ;;  %v981_v9 = vsub.f32 %v6750_v57, %v980_v63 }
  0x37   :  { %6039 = vmatpush3.bf16.msra.mxu0 %v6036_v58  ;;  %v6773_v10 = vand.u32 4294901760, %v101_v1  ;;  %v6776_v11 = vsub.f32 %v6678_v14, %v898_v25  ;;  %v209_v13 = vsub.f32 %v6756_v60, %v208_v5  ;;  %v6787_v22 = vsub.f32 %v6680_v15, %v901_v26 }
  0x38   :  { %v964_v8 = vand.u32 4294901760, %v963_v62  ;;  %5415 = vmatprep.mubr.f32.mxu0 %v200_v3  ;;  %v6782_v21 = vsub.f32 %v98_v0, %v6768_v7  ;;  %v104_v30 = vsel %vm84_vm1, %v73_v2, 0  ;;  %v982_v31 = vand.u32 4294901760, %v981_v9 }
  0x39   :  { %v6791_v14 = vsub.f32 %v101_v1, %v6773_v10  ;;  %v987_v25 = vand.u32 4294901760, %v6776_v11  ;;  %v6794_v35 = vand.u32 4294901760, %v104_v30  ;;  %v210_v38 = vand.u32 4294901760, %v209_v13 }
  0x3a   :  { %5513 = vmatmul.mubr.f32.vlgmr.msra.gmra.mrb[0].mxu1 %v964_v8  ;;  %v218_v40 = vand.u32 4294901760, %v6782_v21  ;;  %v994_v42 = vand.u32 4294901760, %v6787_v22  ;;  %v107_v15 = vsel %vm84_vm1, %v74_v12, 0  ;;  %v6801_v26 = vpack.c.bf16 %v982_v31, %v975_v6 }
  0x3b   :  { %5523 = vmatprep.mubr.msk.f32.mxu1 %vm6597_vm2, %v6598_v20  ;;  %v228_v44 = vand.u32 4294901760, %v6791_v14  ;;  %v988_v45 = vsub.f32 %v6776_v11, %v987_v25  ;;  %v6808_v46 = vsub.f32 %v104_v30, %v6794_v35  ;;  %5416 = vmatmul.mubr.f32.gmra.mrb[2].mxu0 %v210_v38  ;;  %v6814_v53 = vand.u32 4294901760, %v107_v15 }
  0x3c   :  { %v219_v48 = vsub.f32 %v6782_v21, %v218_v40  ;;  %v995_v52 = vsub.f32 %v6787_v22, %v994_v42  ;;  %6064 = vmatpush3.bf16.msra.mxu1 %v6801_v26  ;;  %v6040_v59 = vpack.c.bf16 %v6694_v24, %v6688_v19  ;;  %v6839_v12 = vpack.c.bf16 %v6750_v57, %v6732_v43 }
  0x3d   :  { %v229_v54 = vsub.f32 %v6791_v14, %v228_v44  ;;  %v989_v55 = vand.u32 4294901760, %v988_v45  ;;  %v238_v58 = vand.u32 4294901760, %v6808_v46  ;;  %6065 = vmatprep.subr.bf16.mxu1 %v6596_v4  ;;  %v6825_v0 = vsub.f32 %v107_v15, %v6814_v53 }
  0x3e   :  { %v220_v61 = vand.u32 4294901760, %v219_v48  ;;  %v996_v62 = vand.u32 4294901760, %v995_v52  ;;  %6041 = vmatprep.subr.bf16.mxu0 %v6040_v59  ;;  %v6846_v30 = vpack.c.bf16 %v6787_v22, %v6776_v11  ;;  %v6870_v22 = vpack.c.bf16 %v980_v63, %v973_v51  ;;  %v884_v63 = vld [vmem:[#allocation3] sm:$0xff] }
  0x3f   :  { %v230_v1 = vand.u32 4294901760, %v229_v54  ;;  %v239_v2 = vsub.f32 %v6808_v46, %v238_v58  ;;  %v248_v6 = vand.u32 4294901760, %v6825_v0  ;;  %v6880_v31 = vpack.c.bf16 %v994_v42, %v987_v25 }
  0x40   :  { %5418 = vmatprep.mubr.f32.mxu0 %v220_v61  ;;  %v6830_v3 = vpack.c.bf16 %v996_v62, %v989_v55  ;;  %v6048_v43 = vpack.c.bf16 %v266_v32, %v259_v29 }
  0x41   :  { %5419 = vmatmul.mubr.f32.gmra.mrb[4].mxu0 %v230_v1  ;;  %v240_v8 = vand.u32 4294901760, %v239_v2  ;;  %v249_v9 = vsub.f32 %v6825_v0, %v248_v6 }
  0x42   :  { %6067 = vmatpush3.bf16.msra.mxu1 %v6830_v3 }
  0x43   :  { %5421 = vmatprep.mubr.f32.mxu0 %v240_v8  ;;  %6068 = vmatprep.subr.bf16.mxu1 %v6596_v4  ;;  %v250_v13 = vand.u32 4294901760, %v249_v9 }
  0x45   :  { %5524 = vmatmul.mubr.f32.vlgmr.msra.gmra.mrb[0].mxu1 %v6723_v39  ;;  %5422 = vmatmul.mubr.f32.gmra.mrb[6].mxu0 %v250_v13 }
  0x46   :  { %6070 = vmatpush3.bf16.msra.mxu1 %v6839_v12  ;;  %5428 = vmatprep.mubr.f32.mxu0 %v6684_v17 }
  0x47   :  { %6071 = vmatprep.subr.bf16.mxu1 %v6596_v4  ;;  %5534 = vmatprep.mubr.msk.f32.mxu1 %vm6597_vm2, %v6598_v20 }
  0x49   :  { %5429 = vmatmul.mubr.f32.vlgmr.msra.gmra.mrb[0].mxu0 %v6686_v18 }
  0x4a   :  { %6073 = vmatpush3.bf16.msra.mxu1 %v6846_v30  ;;  %6043 = vmatpush3.bf16.msra.mxu0 %v6040_v59 }
  0x4b   :  { %5431 = vmatprep.mubr.f32.mxu0 %v6714_v34  ;;  %6074 = vmatprep.subr.bf16.mxu1 %v6596_v4 }
  0x4c   :  { %6045 = vmatprep.subr.bf16.mxu0 %v6682_v16 }
  0x4d   :  { %5535 = vmatmul.mubr.f32.vlgmr.msra.gmra.mrb[0].mxu1 %v6741_v47  ;;  %5432 = vmatmul.mubr.f32.gmra.mrb[2].mxu0 %v6745_v50 }
  0x4e   :  { %6076 = vmatpush3.bf16.msra.mxu1 %v6692_v23  ;;  %5434 = vmatprep.mubr.f32.mxu0 %v6768_v7 }
  0x4f   :  { %6077 = vmatprep.subr.bf16.mxu1 %v6596_v4  ;;  %5545 = vmatprep.mubr.msk.f32.mxu1 %vm6597_vm2, %v6598_v20 }
  0x51   :  { %5435 = vmatmul.mubr.f32.gmra.mrb[4].mxu0 %v6773_v10 }
  0x52   :  { %6079 = vmatpush3.bf16.msra.mxu1 %v6712_v33  ;;  %5437 = vmatprep.mubr.f32.mxu0 %v6794_v35 }
  0x53   :  { %6080 = vmatprep.subr.bf16.mxu1 %v6596_v4 }
  0x55   :  { %5546 = vmatmul.mubr.f32.vlgmr.msra.gmra.mrb[0].mxu1 %v962_v56  ;;  %5438 = vmatmul.mubr.f32.gmra.mrb[6].mxu0 %v6814_v53 }
  0x56   :  { %6082 = vmatpush3.bf16.msra.mxu1 %v6870_v22  ;;  %5444 = vmatprep.mubr.f32.mxu0 %v6700_v27 }
  0x57   :  { %6083 = vmatprep.subr.bf16.mxu1 %v6596_v4  ;;  %5556 = vmatprep.mubr.msk.f32.mxu1 %vm6597_vm2, %v6598_v20 }
  0x59   :  { %5445 = vmatmul.mubr.f32.vlgmr.msra.gmra.mrb[0].mxu0 %v6703_v28 }
  0x5a   :  { %6085 = vmatpush3.bf16.msra.mxu1 %v6880_v31  ;;  %6047 = vmatpush3.bf16.msra.mxu0 %v6682_v16 }
  0x5b   :  { %5447 = vmatprep.mubr.f32.mxu0 %v6729_v41  ;;  %6086 = vmatprep.subr.bf16.mxu1 %v6596_v4 }
  0x5c   :  { %6049 = vmatprep.subr.bf16.mxu0 %v6048_v43 }
  0x5d   :  { %5557 = vmatmul.mubr.f32.vlgmr.msra.gmra.mrb[0].mxu1 %v6723_v39  ;;  %5448 = vmatmul.mubr.f32.gmra.mrb[2].mxu0 %v6756_v60 }
  0x5e   :  { %6088 = vmatpush3.bf16.msra.mxu1 %v6692_v23  ;;  %5450 = vmatprep.mubr.f32.mxu0 %v6782_v21 }
  0x5f   :  { %6089 = vmatprep.subr.bf16.mxu1 %v6596_v4  ;;  %5567 = vmatprep.mubr.msk.f32.mxu1 %vm6597_vm2, %v6598_v20 }
  0x61   :  { %5451 = vmatmul.mubr.f32.gmra.mrb[4].mxu0 %v6791_v14 }
  0x62   :  { %6091 = vmatpush3.bf16.msra.mxu1 %v6712_v33  ;;  %5453 = vmatprep.mubr.f32.mxu0 %v6808_v46 }
  0x63   :  { %6092 = vmatprep.subr.bf16.mxu1 %v6596_v4 }
  0x65   :  { %5568 = vmatmul.mubr.f32.vlgmr.msra.gmra.mrb[0].mxu1 %v6723_v39  ;;  %5454 = vmatmul.mubr.f32.gmra.mrb[6].mxu0 %v6825_v0 }
  0x66   :  { %6094 = vmatpush3.bf16.msra.mxu1 %v6692_v23  ;;  %5460 = vmatprep.mubr.f32.mxu0 %v178_v36 }
  0x67   :  { %6095 = vmatprep.subr.bf16.mxu1 %v6596_v4  ;;  %5578 = vmatprep.mubr.msk.f32.mxu1 %vm6597_vm2, %v6598_v20 }
  0x69   :  { %5461 = vmatmul.mubr.f32.vlgmr.msra.gmra.mrb[0].mxu0 %v188_v37 }
  0x6a   :  { %6097 = vmatpush3.bf16.msra.mxu1 %v6712_v33  ;;  %6051 = vmatpush3.bf16.msra.mxu0 %v6048_v43 }
  0x6b   :  { %5463 = vmatprep.mubr.f32.mxu0 %v198_v49  ;;  %6053 = vmatprep.subr.bf16.mxu0 %v6682_v16 }
  0x6c   :  { %6098 = vmatprep.subr.bf16.mxu1 %v6596_v4 }
  0x6d   :  { %5464 = vmatmul.mubr.f32.gmra.mrb[2].mxu0 %v208_v5 }
  0x6e   :  { %5466 = vmatprep.mubr.f32.mxu0 %v218_v40 }
  0x71   :  { %5467 = vmatmul.mubr.f32.gmra.mrb[4].mxu0 %v228_v44 }
  0x72   :  { %5469 = vmatprep.mubr.f32.mxu0 %v238_v58 }
  0x75   :  { %5470 = vmatmul.mubr.f32.gmra.mrb[6].mxu0 %v248_v6 }
  0x76   :  { %5476 = vmatprep.mubr.f32.mxu0 %v6684_v17 }
  0x79   :  { %5477 = vmatmul.mubr.f32.vlgmr.msra.gmra.mrb[0].mxu0 %v6686_v18 }
  0x7a   :  { %6055 = vmatpush3.bf16.msra.mxu0 %v6682_v16  ;;  %5479 = vmatprep.mubr.f32.mxu0 %v6714_v34 }
  0x7b   :  { %6128 = vmatprep.subr.bf16.mxu0 %v6596_v4 }
  0x7d   :  { %5480 = vmatmul.mubr.f32.gmra.mrb[2].mxu0 %v6745_v50 }
  0x7e   :  { %5482 = vmatprep.mubr.f32.mxu0 %v6768_v7 }
  0x81   :  { %5483 = vmatmul.mubr.f32.gmra.mrb[4].mxu0 %v6773_v10 }
  0x82   :  { %5485 = vmatprep.mubr.f32.mxu0 %v6794_v35 }
  0x85   :  { %5486 = vmatmul.mubr.f32.gmra.mrb[6].mxu0 %v6814_v53 }
  0x86   :  { %5492 = vmatprep.mubr.f32.mxu0 %v6684_v17 }
  0x89   :  { %5493 = vmatmul.mubr.f32.vlgmr.msra.gmra.mrb[0].mxu0 %v6686_v18  ;;  %v5106_v18 = vld [vmem:[%s7314_s5] ss:$0 sm:$0xff]  ;;  %s6599_s5 = smov 64  }
  0x8a   :  { %5495 = vmatprep.mubr.f32.mxu0 %v6714_v34  ;;  %6130 = vmatpush3.bf16.msra.mxu0 %v6692_v23 }
  0x8b   :  { %6131 = vmatprep.subr.bf16.mxu0 %v6596_v4 }
  0x8d   :  { %5496 = vmatmul.mubr.f32.gmra.mrb[2].mxu0 %v6745_v50 }
  0x8e   :  { %5498 = vmatprep.mubr.f32.mxu0 %v6768_v7  ;;  %6133 = vmatpush3.bf16.msra.mxu0 %v6712_v33 }
  0x8f   :  { %6134 = vmatprep.subr.bf16.mxu0 %v6596_v4 }
  0x91   :  { %5499 = vmatmul.mubr.f32.gmra.mrb[4].mxu0 %v6773_v10 }
  0x92   :  { %5501 = vmatprep.mubr.f32.mxu0 %v6794_v35 }
  0x95   :  { %5502 = vmatmul.mubr.f32.gmra.mrb[6].mxu0 %v6814_v53 }
  0x96   :  { %5644 = vmatprep.mubr.msk.f32.mxu0 %vm6597_vm2, %v6598_v20 }
 0x138   :  { %v1372_v16 = vpop.f32.mrb[0].mxu1 }
 0x139   :  { %v5569_v17 = vpop.f32.mrb[1].mxu1 }
 0x15c   :  { %v5494_v19 = vpop.f32.mrb[0].mxu0 }
 0x15d   :  { %v6958_v24 = vadd.f32 %v5494_v19, %v5106_v18  ;;  %v823_v27 = vpop.f32.mrb[1].mxu0 }
 0x15e   :  { %v6345_v28 = vadd.f32 %v5106_v18, %v823_v27 }
 0x160   :  { %v1376_v29 = vadd.f32 %v6345_v28, %v1372_v16  ;;  %v5497_v32 = vpop.f32.mrb[2].mxu0 }
 0x161   :  { %v6960_v34 = vadd.f32 %v5497_v32, %v5106_v18  ;;  %v835_v36 = vpop.f32.mrb[3].mxu0 }
 0x162   :  { %6487 = vtanh.f32 %v1376_v29  ;;  %v6962_v37 = vadd.f32 %v5106_v18, %v835_v36 }
 0x164   :  { %v5500_v39 = vpop.f32.mrb[4].mxu0 }
 0x165   :  { %v6964_v41 = vadd.f32 %v5500_v39, %v5106_v18  ;;  %v847_v47 = vpop.f32.mrb[5].mxu0 }
 0x166   :  { %v6966_v49 = vadd.f32 %v5106_v18, %v847_v47 }
 0x168   :  { %v5503_v50 = vpop.f32.mrb[6].mxu0 }
 0x169   :  { %v6968_v51 = vadd.f32 %v5503_v50, %v5106_v18  ;;  %v859_v56 = vpop.f32.mrb[7].mxu0 }
 0x16a   :  { %v6970_v57 = vadd.f32 %v5106_v18, %v859_v56 }
 0x16c   :  { %v6488_v60 = vpop.eup %6487 }
 0x16d   :  { %1386 = vrot.lane.b32.xlu0 %v6488_v60, %s6599_s5  ;;  %v1378_v5 = vmul.f32 0.5, %v6488_v60 }
 0x16f   :  { %v1379_v7 = vadd.f32 0.5, %v1378_v5 }
 0x171   :  { %1381 = vrot.lane.b32.xlu0 %v884_v63, %s6600_s27 }
 0x1df   :  { %v1387_v10 = vpop.permute.xlu0 %1386 }
 0x1e0   :  { %v1389_v11 = vmul.f32 %v1387_v10, %v1379_v7 }
 0x1e2   :  { %1391 = vrot.lane.b32.xlu1 %v1389_v11, %s6600_s27 }
 0x1e3   :  { %v1382_v21 = vpop.permute.xlu0 %1381 }
 0x1e4   :  { %v1384_v14 = vmul.f32 %v1382_v21, %v1379_v7 }
 0x254   :  { %v1392_v25 = vpop.permute.xlu1 %1391 }
 0x255   :  { %v1394_v35 = vadd.f32 %v1392_v25, %v1384_v14 }
 0x257   :  { %6489 = vtanh.f32 %v1394_v35 }
 0x261   :  { %v6490_v38 = vpop.eup %6489 }
 0x262   :  { %1397 = vrot.lane.b32.xlu1 %v6490_v38, %s6599_s5 }
 0x2d4   :  { %v1398_v40 = vpop.permute.xlu1 %1397 }
 0x2d5   :  { %v6976_v42 = vmul.f32 %v1398_v40, %v1379_v7 }
 0x2d7   :  { %1416 = vrot.lane.b32.xlu0 %v6976_v42, %s6600_s27 }
 0x349   :  { %v1417_v15 = vpop.permute.xlu0 %1416 }
 0x34a   :  { %v1418_v44 = vsel %vm57_vm0, %v1417_v15, 0 }
 0x34b   :  { %v1489_v45 = vand.u32 4294901760, %v1418_v44 }
 0x34d   :  { %v1490_v46 = vsub.f32 %v1418_v44, %v1489_v45 }
 0x34f   :  { %v1491_v48 = vand.u32 4294901760, %v1490_v46 }
 0x351   :  { %v1492_v52 = vsub.f32 %v1490_v46, %v1491_v48 }
 0x353   :  { %v1493_v53 = vand.u32 4294901760, %v1492_v52 }
 0x355   :  { %5579 = vmatmul.mubr.f32.vlgmr.msra.gmra.mrb[2].mxu1 %v1493_v53 }
 0x356   :  { %6100 = vmatpush3.bf16.msra.mxu1 %v6801_v26  ;;  %5589 = vmatprep.mubr.msk.f32.mxu1 %vm6597_vm2, %v6598_v20 }
 0x357   :  { %6101 = vmatprep.subr.bf16.mxu1 %v6596_v4 }
 0x35a   :  { %6103 = vmatpush3.bf16.msra.mxu1 %v6830_v3 }
 0x35b   :  { %6104 = vmatprep.subr.bf16.mxu1 %v6596_v4 }
 0x35d   :  { %5590 = vmatmul.mubr.f32.vlgmr.msra.gmra.mrb[2].mxu1 %v1489_v45 }
 0x35e   :  { %6106 = vmatpush3.bf16.msra.mxu1 %v6839_v12  ;;  %5600 = vmatprep.mubr.msk.f32.mxu1 %vm6597_vm2, %v6598_v20 }
 0x35f   :  { %6107 = vmatprep.subr.bf16.mxu1 %v6596_v4 }
 0x362   :  { %6109 = vmatpush3.bf16.msra.mxu1 %v6846_v30 }
 0x363   :  { %6110 = vmatprep.subr.bf16.mxu1 %v6596_v4 }
 0x365   :  { %5601 = vmatmul.mubr.f32.vlgmr.msra.gmra.mrb[2].mxu1 %v1490_v46 }
 0x366   :  { %6112 = vmatpush3.bf16.msra.mxu1 %v6692_v23  ;;  %5611 = vmatprep.mubr.msk.f32.mxu1 %vm6597_vm2, %v6598_v20 }
 0x367   :  { %6113 = vmatprep.subr.bf16.mxu1 %v6596_v4 }
 0x36a   :  { %6115 = vmatpush3.bf16.msra.mxu1 %v6712_v33 }
 0x36b   :  { %6116 = vmatprep.subr.bf16.mxu1 %v6596_v4 }
 0x36d   :  { %5612 = vmatmul.mubr.f32.vlgmr.msra.gmra.mrb[2].mxu1 %v1491_v48 }
 0x36e   :  { %6118 = vmatpush3.bf16.msra.mxu1 %v6870_v22  ;;  %5622 = vmatprep.mubr.msk.f32.mxu1 %vm6597_vm2, %v6598_v20 }
 0x36f   :  { %6119 = vmatprep.subr.bf16.mxu1 %v6596_v4 }
 0x372   :  { %6121 = vmatpush3.bf16.msra.mxu1 %v6880_v31 }
 0x373   :  { %6122 = vmatprep.subr.bf16.mxu1 %v6596_v4 }
 0x375   :  { %5623 = vmatmul.mubr.f32.vlgmr.msra.gmra.mrb[2].mxu1 %v1489_v45 }
 0x376   :  { %6124 = vmatpush3.bf16.msra.mxu1 %v6692_v23  ;;  %5633 = vmatprep.mubr.msk.f32.mxu1 %vm6597_vm2, %v6598_v20 }
 0x377   :  { %6125 = vmatprep.subr.bf16.mxu1 %v6596_v4 }
 0x37a   :  { %6127 = vmatpush3.bf16.msra.mxu1 %v6712_v33 }
 0x37b   :  { %6164 = vmatprep.subr.bf16.mxu1 %v6596_v4 }
 0x37d   :  { %5634 = vmatmul.mubr.f32.vlgmr.msra.gmra.mrb[2].mxu1 %v1489_v45 }
 0x37e   :  { %6166 = vmatpush3.bf16.msra.mxu1 %v6692_v23  ;;  %5710 = vmatprep.mubr.msk.f32.mxu1 %vm6597_vm2, %v6598_v20 }
 0x37f   :  { %6167 = vmatprep.subr.bf16.mxu1 %v6596_v4 }
 0x382   :  { %6169 = vmatpush3.bf16.msra.mxu1 %v6712_v33 }
 0x383   :  { %6170 = vmatprep.subr.bf16.mxu1 %v6596_v4 }
 0x450   :  { %v1901_v54 = vpop.f32.mrb[2].mxu1 }
 0x451   :  { %v1905_v55 = vadd.f32 %v6958_v24, %v1901_v54  ;;  %v5635_v58 = vpop.f32.mrb[3].mxu1 }
 0x453   :  { %6491 = vtanh.f32 %v1905_v55 }
 0x45d   :  { %v6492_v59 = vpop.eup %6491 }
 0x45e   :  { %1911 = vrot.lane.b32.xlu1 %v6492_v59, %s6599_s5  ;;  %v1907_v61 = vmul.f32 0.5, %v6492_v59 }
 0x460   :  { %v1908_v62 = vadd.f32 0.5, %v1907_v61 }
 0x462   :  { %v1909_v2 = vmul.f32 %v1908_v62, %v1394_v35 }
 0x4d0   :  { %v1912_v0 = vpop.permute.xlu1 %1911 }
 0x4d1   :  { %v1914_v1 = vmul.f32 %v1912_v0, %v1908_v62 }
 0x4d3   :  { %1916 = vrot.lane.b32.xlu0 %v1914_v1, %s6600_s27 }
 0x545   :  { %v1917_v6 = vpop.permute.xlu0 %1916 }
 0x546   :  { %v1919_v8 = vadd.f32 %v1917_v6, %v1909_v2 }
 0x548   :  { %6493 = vtanh.f32 %v1919_v8 }
 0x552   :  { %v6494_v9 = vpop.eup %6493 }
 0x553   :  { %1922 = vrot.lane.b32.xlu1 %v6494_v9, %s6599_s5 }
 0x5c5   :  { %v1923_v13 = vpop.permute.xlu1 %1922 }
 0x5c6   :  { %v7021_v43 = vmul.f32 %v1923_v13, %v1908_v62 }
 0x5c8   :  { %1938 = vrot.lane.b32.xlu0 %v7021_v43, %s6600_s27 }
 0x63a   :  { %v1939_v16 = vpop.permute.xlu0 %1938 }
 0x63b   :  { %v1940_v17 = vsel %vm57_vm0, %v1939_v16, 0 }
 0x63c   :  { %v2011_v18 = vand.u32 4294901760, %v1940_v17 }
 0x63e   :  { %v2012_v19 = vsub.f32 %v1940_v17, %v2011_v18 }
 0x640   :  { %v2013_v24 = vand.u32 4294901760, %v2012_v19 }
 0x642   :  { %v2014_v27 = vsub.f32 %v2012_v19, %v2013_v24 }
 0x644   :  { %v2015_v28 = vand.u32 4294901760, %v2014_v27 }
 0x646   :  { %5645 = vmatmul.mubr.f32.vlgmr.msra.gmra.mrb[8].mxu0 %v2015_v28 }
 0x647   :  { %6136 = vmatpush3.bf16.msra.mxu0 %v6801_v26  ;;  %5655 = vmatprep.mubr.msk.f32.mxu0 %vm6597_vm2, %v6598_v20 }
 0x648   :  { %6137 = vmatprep.subr.bf16.mxu0 %v6596_v4 }
 0x64b   :  { %6139 = vmatpush3.bf16.msra.mxu0 %v6830_v3 }
 0x64c   :  { %6140 = vmatprep.subr.bf16.mxu0 %v6596_v4 }
 0x64e   :  { %5656 = vmatmul.mubr.f32.vlgmr.msra.gmra.mrb[8].mxu0 %v2011_v18 }
 0x64f   :  { %6142 = vmatpush3.bf16.msra.mxu0 %v6839_v12  ;;  %5666 = vmatprep.mubr.msk.f32.mxu0 %vm6597_vm2, %v6598_v20 }
 0x650   :  { %6143 = vmatprep.subr.bf16.mxu0 %v6596_v4 }
 0x653   :  { %6145 = vmatpush3.bf16.msra.mxu0 %v6846_v30 }
 0x654   :  { %6146 = vmatprep.subr.bf16.mxu0 %v6596_v4 }
 0x656   :  { %5667 = vmatmul.mubr.f32.vlgmr.msra.gmra.mrb[8].mxu0 %v2012_v19 }
 0x657   :  { %6148 = vmatpush3.bf16.msra.mxu0 %v6692_v23  ;;  %5677 = vmatprep.mubr.msk.f32.mxu0 %vm6597_vm2, %v6598_v20 }
 0x658   :  { %6149 = vmatprep.subr.bf16.mxu0 %v6596_v4 }
 0x65b   :  { %6151 = vmatpush3.bf16.msra.mxu0 %v6712_v33 }
 0x65c   :  { %6152 = vmatprep.subr.bf16.mxu0 %v6596_v4 }
 0x65e   :  { %5678 = vmatmul.mubr.f32.vlgmr.msra.gmra.mrb[8].mxu0 %v2013_v24 }
 0x65f   :  { %6154 = vmatpush3.bf16.msra.mxu0 %v6870_v22  ;;  %5688 = vmatprep.mubr.msk.f32.mxu0 %vm6597_vm2, %v6598_v20 }
 0x660   :  { %6155 = vmatprep.subr.bf16.mxu0 %v6596_v4 }
 0x663   :  { %6157 = vmatpush3.bf16.msra.mxu0 %v6880_v31 }
 0x664   :  { %6158 = vmatprep.subr.bf16.mxu0 %v6596_v4 }
 0x666   :  { %5689 = vmatmul.mubr.f32.vlgmr.msra.gmra.mrb[8].mxu0 %v2011_v18 }
 0x667   :  { %6160 = vmatpush3.bf16.msra.mxu0 %v6692_v23  ;;  %5699 = vmatprep.mubr.msk.f32.mxu0 %vm6597_vm2, %v6598_v20 }
 0x668   :  { %6161 = vmatprep.subr.bf16.mxu0 %v6596_v4 }
 0x66b   :  { %6163 = vmatpush3.bf16.msra.mxu0 %v6712_v33 }
 0x66c   :  { %6200 = vmatprep.subr.bf16.mxu0 %v6596_v4 }
 0x66e   :  { %5700 = vmatmul.mubr.f32.vlgmr.msra.gmra.mrb[8].mxu0 %v2011_v18 }
 0x66f   :  { %6202 = vmatpush3.bf16.msra.mxu0 %v6692_v23  ;;  %5776 = vmatprep.mubr.msk.f32.mxu0 %vm6597_vm2, %v6598_v20 }
 0x670   :  { %6203 = vmatprep.subr.bf16.mxu0 %v6596_v4 }
 0x673   :  { %6205 = vmatpush3.bf16.msra.mxu0 %v6712_v33 }
 0x674   :  { %6206 = vmatprep.subr.bf16.mxu0 %v6596_v4 }
 0x741   :  { %v2423_v29 = vpop.f32.mrb[8].mxu0 }
 0x742   :  { %v2427_v32 = vadd.f32 %v6962_v37, %v2423_v29  ;;  %v5701_v36 = vpop.f32.mrb[9].mxu0 }
 0x744   :  { %6495 = vtanh.f32 %v2427_v32 }
 0x74e   :  { %v6496_v39 = vpop.eup %6495 }
 0x74f   :  { %2433 = vrot.lane.b32.xlu1 %v6496_v39, %s6599_s5  ;;  %v2429_v47 = vmul.f32 0.5, %v6496_v39 }
 0x751   :  { %v2430_v50 = vadd.f32 0.5, %v2429_v47 }
 0x753   :  { %v2431_v63 = vmul.f32 %v2430_v50, %v1919_v8 }
 0x7c1   :  { %v2434_v56 = vpop.permute.xlu1 %2433 }
 0x7c2   :  { %v2436_v60 = vmul.f32 %v2434_v56, %v2430_v50 }
 0x7c4   :  { %2438 = vrot.lane.b32.xlu0 %v2436_v60, %s6600_s27 }
 0x836   :  { %v2439_v5 = vpop.permute.xlu0 %2438 }
 0x837   :  { %v2441_v7 = vadd.f32 %v2439_v5, %v2431_v63 }
 0x839   :  { %6497 = vtanh.f32 %v2441_v7 }
 0x843   :  { %v6498_v10 = vpop.eup %6497 }
 0x844   :  { %2444 = vrot.lane.b32.xlu1 %v6498_v10, %s6599_s5 }
 0x8b6   :  { %v2445_v11 = vpop.permute.xlu1 %2444 }
 0x8b7   :  { %v7066_v37 = vmul.f32 %v2445_v11, %v2430_v50 }
 0x8b9   :  { %2460 = vrot.lane.b32.xlu0 %v7066_v37, %s6600_s27 }
 0x92b   :  { %v2461_v21 = vpop.permute.xlu0 %2460 }
 0x92c   :  { %v2462_v14 = vsel %vm57_vm0, %v2461_v21, 0 }
 0x92d   :  { %v2533_v25 = vand.u32 4294901760, %v2462_v14 }
 0x92f   :  { %v2534_v35 = vsub.f32 %v2462_v14, %v2533_v25 }
 0x931   :  { %v2535_v38 = vand.u32 4294901760, %v2534_v35 }
 0x933   :  { %v2536_v40 = vsub.f32 %v2534_v35, %v2535_v38 }
 0x935   :  { %v2537_v15 = vand.u32 4294901760, %v2536_v40 }
 0x937   :  { %5711 = vmatmul.mubr.f32.vlgmr.msra.gmra.mrb[4].mxu1 %v2537_v15 }
 0x938   :  { %6172 = vmatpush3.bf16.msra.mxu1 %v6801_v26  ;;  %5721 = vmatprep.mubr.msk.f32.mxu1 %vm6597_vm2, %v6598_v20 }
 0x939   :  { %6173 = vmatprep.subr.bf16.mxu1 %v6596_v4 }
 0x93c   :  { %6175 = vmatpush3.bf16.msra.mxu1 %v6830_v3 }
 0x93d   :  { %6176 = vmatprep.subr.bf16.mxu1 %v6596_v4 }
 0x93f   :  { %5722 = vmatmul.mubr.f32.vlgmr.msra.gmra.mrb[4].mxu1 %v2533_v25 }
 0x940   :  { %6178 = vmatpush3.bf16.msra.mxu1 %v6839_v12  ;;  %5732 = vmatprep.mubr.msk.f32.mxu1 %vm6597_vm2, %v6598_v20 }
 0x941   :  { %6179 = vmatprep.subr.bf16.mxu1 %v6596_v4 }
 0x944   :  { %6181 = vmatpush3.bf16.msra.mxu1 %v6846_v30 }
 0x945   :  { %6182 = vmatprep.subr.bf16.mxu1 %v6596_v4 }
 0x947   :  { %5733 = vmatmul.mubr.f32.vlgmr.msra.gmra.mrb[4].mxu1 %v2534_v35 }
 0x948   :  { %6184 = vmatpush3.bf16.msra.mxu1 %v6692_v23  ;;  %5743 = vmatprep.mubr.msk.f32.mxu1 %vm6597_vm2, %v6598_v20 }
 0x949   :  { %6185 = vmatprep.subr.bf16.mxu1 %v6596_v4 }
 0x94c   :  { %6187 = vmatpush3.bf16.msra.mxu1 %v6712_v33 }
 0x94d   :  { %6188 = vmatprep.subr.bf16.mxu1 %v6596_v4 }
 0x94f   :  { %5744 = vmatmul.mubr.f32.vlgmr.msra.gmra.mrb[4].mxu1 %v2535_v38 }
 0x950   :  { %6190 = vmatpush3.bf16.msra.mxu1 %v6870_v22  ;;  %5754 = vmatprep.mubr.msk.f32.mxu1 %vm6597_vm2, %v6598_v20 }
 0x951   :  { %6191 = vmatprep.subr.bf16.mxu1 %v6596_v4 }
 0x954   :  { %6193 = vmatpush3.bf16.msra.mxu1 %v6880_v31 }
 0x955   :  { %6194 = vmatprep.subr.bf16.mxu1 %v6596_v4 }
 0x957   :  { %5755 = vmatmul.mubr.f32.vlgmr.msra.gmra.mrb[4].mxu1 %v2533_v25 }
 0x958   :  { %6196 = vmatpush3.bf16.msra.mxu1 %v6692_v23  ;;  %5765 = vmatprep.mubr.msk.f32.mxu1 %vm6597_vm2, %v6598_v20 }
 0x959   :  { %6197 = vmatprep.subr.bf16.mxu1 %v6596_v4 }
 0x95c   :  { %6199 = vmatpush3.bf16.msra.mxu1 %v6712_v33 }
 0x95d   :  { %6236 = vmatprep.subr.bf16.mxu1 %v6596_v4 }
 0x95f   :  { %5766 = vmatmul.mubr.f32.vlgmr.msra.gmra.mrb[4].mxu1 %v2533_v25 }
 0x960   :  { %6238 = vmatpush3.bf16.msra.mxu1 %v6692_v23  ;;  %5842 = vmatprep.mubr.msk.f32.mxu1 %vm6597_vm2, %v6598_v20 }
 0x961   :  { %6239 = vmatprep.subr.bf16.mxu1 %v6596_v4 }
 0x964   :  { %6241 = vmatpush3.bf16.msra.mxu1 %v6712_v33 }
 0x965   :  { %6242 = vmatprep.subr.bf16.mxu1 %v6596_v4 }
 0xa32   :  { %v2945_v44 = vpop.f32.mrb[4].mxu1 }
 0xa33   :  { %v2949_v45 = vadd.f32 %v6960_v34, %v2945_v44  ;;  %v5767_v46 = vpop.f32.mrb[5].mxu1 }
 0xa35   :  { %6499 = vtanh.f32 %v2949_v45 }
 0xa3f   :  { %v6500_v48 = vpop.eup %6499 }
 0xa40   :  { %2955 = vrot.lane.b32.xlu1 %v6500_v48, %s6599_s5  ;;  %v2951_v52 = vmul.f32 0.5, %v6500_v48 }
 0xa42   :  { %v2952_v53 = vadd.f32 0.5, %v2951_v52 }
 0xa44   :  { %v2953_v58 = vmul.f32 %v2952_v53, %v2441_v7 }
 0xab2   :  { %v2956_v54 = vpop.permute.xlu1 %2955 }
 0xab3   :  { %v2958_v55 = vmul.f32 %v2956_v54, %v2952_v53 }
 0xab5   :  { %2960 = vrot.lane.b32.xlu0 %v2958_v55, %s6600_s27 }
 0xb27   :  { %v2961_v59 = vpop.permute.xlu0 %2960 }
 0xb28   :  { %v2963_v61 = vadd.f32 %v2961_v59, %v2953_v58 }
 0xb2a   :  { %6501 = vtanh.f32 %v2963_v61 }
 0xb34   :  { %v6502_v62 = vpop.eup %6501 }
 0xb35   :  { %2966 = vrot.lane.b32.xlu1 %v6502_v62, %s6599_s5 }
 0xba7   :  { %v2967_v0 = vpop.permute.xlu1 %2966 }
 0xba8   :  { %v7111_v34 = vmul.f32 %v2967_v0, %v2952_v53 }
 0xbaa   :  { %2982 = vrot.lane.b32.xlu0 %v7111_v34, %s6600_s27 }
 0xc1c   :  { %v2983_v1 = vpop.permute.xlu0 %2982 }
 0xc1d   :  { %v2984_v2 = vsel %vm57_vm0, %v2983_v1, 0 }
 0xc1e   :  { %v3055_v6 = vand.u32 4294901760, %v2984_v2 }
 0xc20   :  { %v3056_v8 = vsub.f32 %v2984_v2, %v3055_v6 }
 0xc22   :  { %v3057_v9 = vand.u32 4294901760, %v3056_v8 }
 0xc24   :  { %v3058_v13 = vsub.f32 %v3056_v8, %v3057_v9 }
 0xc26   :  { %v3059_v16 = vand.u32 4294901760, %v3058_v13 }
 0xc28   :  { %5777 = vmatmul.mubr.f32.vlgmr.msra.gmra.mrb[10].mxu0 %v3059_v16 }
 0xc29   :  { %6208 = vmatpush3.bf16.msra.mxu0 %v6801_v26  ;;  %5787 = vmatprep.mubr.msk.f32.mxu0 %vm6597_vm2, %v6598_v20 }
 0xc2a   :  { %6209 = vmatprep.subr.bf16.mxu0 %v6596_v4 }
 0xc2d   :  { %6211 = vmatpush3.bf16.msra.mxu0 %v6830_v3 }
 0xc2e   :  { %6212 = vmatprep.subr.bf16.mxu0 %v6596_v4 }
 0xc30   :  { %5788 = vmatmul.mubr.f32.vlgmr.msra.gmra.mrb[10].mxu0 %v3055_v6 }
 0xc31   :  { %6214 = vmatpush3.bf16.msra.mxu0 %v6839_v12  ;;  %5798 = vmatprep.mubr.msk.f32.mxu0 %vm6597_vm2, %v6598_v20 }
 0xc32   :  { %6215 = vmatprep.subr.bf16.mxu0 %v6596_v4 }
 0xc35   :  { %6217 = vmatpush3.bf16.msra.mxu0 %v6846_v30 }
 0xc36   :  { %6218 = vmatprep.subr.bf16.mxu0 %v6596_v4 }
 0xc38   :  { %5799 = vmatmul.mubr.f32.vlgmr.msra.gmra.mrb[10].mxu0 %v3056_v8 }
 0xc39   :  { %6220 = vmatpush3.bf16.msra.mxu0 %v6692_v23  ;;  %5809 = vmatprep.mubr.msk.f32.mxu0 %vm6597_vm2, %v6598_v20 }
 0xc3a   :  { %6221 = vmatprep.subr.bf16.mxu0 %v6596_v4 }
 0xc3d   :  { %6223 = vmatpush3.bf16.msra.mxu0 %v6712_v33 }
 0xc3e   :  { %6224 = vmatprep.subr.bf16.mxu0 %v6596_v4 }
 0xc40   :  { %5810 = vmatmul.mubr.f32.vlgmr.msra.gmra.mrb[10].mxu0 %v3057_v9 }
 0xc41   :  { %6226 = vmatpush3.bf16.msra.mxu0 %v6870_v22  ;;  %5820 = vmatprep.mubr.msk.f32.mxu0 %vm6597_vm2, %v6598_v20 }
 0xc42   :  { %6227 = vmatprep.subr.bf16.mxu0 %v6596_v4 }
 0xc45   :  { %6229 = vmatpush3.bf16.msra.mxu0 %v6880_v31 }
 0xc46   :  { %6230 = vmatprep.subr.bf16.mxu0 %v6596_v4 }
 0xc48   :  { %5821 = vmatmul.mubr.f32.vlgmr.msra.gmra.mrb[10].mxu0 %v3055_v6 }
 0xc49   :  { %6232 = vmatpush3.bf16.msra.mxu0 %v6692_v23  ;;  %5831 = vmatprep.mubr.msk.f32.mxu0 %vm6597_vm2, %v6598_v20 }
 0xc4a   :  { %6233 = vmatprep.subr.bf16.mxu0 %v6596_v4 }
 0xc4d   :  { %6235 = vmatpush3.bf16.msra.mxu0 %v6712_v33 }
 0xc4e   :  { %6272 = vmatprep.subr.bf16.mxu0 %v6596_v4 }
 0xc50   :  { %5832 = vmatmul.mubr.f32.vlgmr.msra.gmra.mrb[10].mxu0 %v3055_v6 }
 0xc51   :  { %6274 = vmatpush3.bf16.msra.mxu0 %v6692_v23  ;;  %5908 = vmatprep.mubr.msk.f32.mxu0 %vm6597_vm2, %v6598_v20 }
 0xc52   :  { %6275 = vmatprep.subr.bf16.mxu0 %v6596_v4 }
 0xc55   :  { %6277 = vmatpush3.bf16.msra.mxu0 %v6712_v33 }
 0xc56   :  { %6278 = vmatprep.subr.bf16.mxu0 %v6596_v4 }
 0xd23   :  { %v3467_v17 = vpop.f32.mrb[10].mxu0 }
 0xd24   :  { %v3471_v18 = vadd.f32 %v6966_v49, %v3467_v17  ;;  %v5833_v19 = vpop.f32.mrb[11].mxu0 }
 0xd26   :  { %6503 = vtanh.f32 %v3471_v18 }
 0xd30   :  { %v6504_v24 = vpop.eup %6503 }
 0xd31   :  { %3477 = vrot.lane.b32.xlu1 %v6504_v24, %s6599_s5  ;;  %v3473_v27 = vmul.f32 0.5, %v6504_v24 }
 0xd33   :  { %v3474_v28 = vadd.f32 0.5, %v3473_v27 }
 0xd35   :  { %v3475_v36 = vmul.f32 %v3474_v28, %v2963_v61 }
 0xda3   :  { %v3478_v29 = vpop.permute.xlu1 %3477 }
 0xda4   :  { %v3480_v32 = vmul.f32 %v3478_v29, %v3474_v28 }
 0xda6   :  { %3482 = vrot.lane.b32.xlu0 %v3480_v32, %s6600_s27 }
 0xe18   :  { %v3483_v39 = vpop.permute.xlu0 %3482 }
 0xe19   :  { %v3485_v47 = vadd.f32 %v3483_v39, %v3475_v36 }
 0xe1b   :  { %6505 = vtanh.f32 %v3485_v47 }
 0xe25   :  { %v6506_v50 = vpop.eup %6505 }
 0xe26   :  { %3488 = vrot.lane.b32.xlu1 %v6506_v50, %s6599_s5 }
 0xe98   :  { %v3489_v56 = vpop.permute.xlu1 %3488 }
 0xe99   :  { %v7156_v49 = vmul.f32 %v3489_v56, %v3474_v28 }
 0xe9b   :  { %3504 = vrot.lane.b32.xlu0 %v7156_v49, %s6600_s27 }
 0xf0d   :  { %v3505_v60 = vpop.permute.xlu0 %3504 }
 0xf0e   :  { %v3506_v63 = vsel %vm57_vm0, %v3505_v60, 0 }
 0xf0f   :  { %v3577_v5 = vand.u32 4294901760, %v3506_v63 }
 0xf11   :  { %v3578_v7 = vsub.f32 %v3506_v63, %v3577_v5 }
 0xf13   :  { %v3579_v10 = vand.u32 4294901760, %v3578_v7 }
 0xf15   :  { %v3580_v11 = vsub.f32 %v3578_v7, %v3579_v10 }
 0xf17   :  { %v3581_v21 = vand.u32 4294901760, %v3580_v11 }
 0xf19   :  { %5843 = vmatmul.mubr.f32.vlgmr.msra.gmra.mrb[6].mxu1 %v3581_v21 }
 0xf1a   :  { %6244 = vmatpush3.bf16.msra.mxu1 %v6801_v26  ;;  %5853 = vmatprep.mubr.msk.f32.mxu1 %vm6597_vm2, %v6598_v20 }
 0xf1b   :  { %6245 = vmatprep.subr.bf16.mxu1 %v6596_v4 }
 0xf1e   :  { %6247 = vmatpush3.bf16.msra.mxu1 %v6830_v3 }
 0xf1f   :  { %6248 = vmatprep.subr.bf16.mxu1 %v6596_v4 }
 0xf21   :  { %5854 = vmatmul.mubr.f32.vlgmr.msra.gmra.mrb[6].mxu1 %v3577_v5 }
 0xf22   :  { %6250 = vmatpush3.bf16.msra.mxu1 %v6839_v12  ;;  %5864 = vmatprep.mubr.msk.f32.mxu1 %vm6597_vm2, %v6598_v20 }
 0xf23   :  { %6251 = vmatprep.subr.bf16.mxu1 %v6596_v4 }
 0xf26   :  { %6253 = vmatpush3.bf16.msra.mxu1 %v6846_v30 }
 0xf27   :  { %6254 = vmatprep.subr.bf16.mxu1 %v6596_v4 }
 0xf29   :  { %5865 = vmatmul.mubr.f32.vlgmr.msra.gmra.mrb[6].mxu1 %v3578_v7 }
 0xf2a   :  { %6256 = vmatpush3.bf16.msra.mxu1 %v6692_v23  ;;  %5875 = vmatprep.mubr.msk.f32.mxu1 %vm6597_vm2, %v6598_v20 }
 0xf2b   :  { %6257 = vmatprep.subr.bf16.mxu1 %v6596_v4 }
 0xf2e   :  { %6259 = vmatpush3.bf16.msra.mxu1 %v6712_v33 }
 0xf2f   :  { %6260 = vmatprep.subr.bf16.mxu1 %v6596_v4 }
 0xf31   :  { %5876 = vmatmul.mubr.f32.vlgmr.msra.gmra.mrb[6].mxu1 %v3579_v10 }
 0xf32   :  { %6262 = vmatpush3.bf16.msra.mxu1 %v6870_v22  ;;  %5886 = vmatprep.mubr.msk.f32.mxu1 %vm6597_vm2, %v6598_v20 }
 0xf33   :  { %6263 = vmatprep.subr.bf16.mxu1 %v6596_v4 }
 0xf36   :  { %6265 = vmatpush3.bf16.msra.mxu1 %v6880_v31 }
 0xf37   :  { %6266 = vmatprep.subr.bf16.mxu1 %v6596_v4 }
 0xf39   :  { %5887 = vmatmul.mubr.f32.vlgmr.msra.gmra.mrb[6].mxu1 %v3577_v5 }
 0xf3a   :  { %6268 = vmatpush3.bf16.msra.mxu1 %v6692_v23  ;;  %5897 = vmatprep.mubr.msk.f32.mxu1 %vm6597_vm2, %v6598_v20 }
 0xf3b   :  { %6269 = vmatprep.subr.bf16.mxu1 %v6596_v4 }
 0xf3e   :  { %6271 = vmatpush3.bf16.msra.mxu1 %v6712_v33 }
 0xf3f   :  { %6308 = vmatprep.subr.bf16.mxu1 %v6596_v4 }
 0xf41   :  { %5898 = vmatmul.mubr.f32.vlgmr.msra.gmra.mrb[6].mxu1 %v3577_v5 }
 0xf42   :  { %6310 = vmatpush3.bf16.msra.mxu1 %v6692_v23  ;;  %5974 = vmatprep.mubr.msk.f32.mxu1 %vm6597_vm2, %v6598_v20 }
 0xf43   :  { %6311 = vmatprep.subr.bf16.mxu1 %v6596_v4 }
 0xf46   :  { %6313 = vmatpush3.bf16.msra.mxu1 %v6712_v33 }
 0xf47   :  { %6314 = vmatprep.subr.bf16.mxu1 %v6596_v4 }
0x1014   :  { %v3989_v14 = vpop.f32.mrb[6].mxu1 }
0x1015   :  { %v3993_v25 = vadd.f32 %v6964_v41, %v3989_v14  ;;  %v5899_v35 = vpop.f32.mrb[7].mxu1 }
0x1016   :  { %v885_v35 = vld [vmem:[#allocation4] sm:$0xff] }
0x1017   :  { %6507 = vtanh.f32 %v3993_v25 }
0x1021   :  { %v6508_v38 = vpop.eup %6507 }
0x1022   :  { %3999 = vrot.lane.b32.xlu1 %v6508_v38, %s6599_s5  ;;  %v3995_v40 = vmul.f32 0.5, %v6508_v38 }
0x1024   :  { %v3996_v15 = vadd.f32 0.5, %v3995_v40 }
0x1026   :  { %v3997_v46 = vmul.f32 %v3996_v15, %v3485_v47 }
0x1094   :  { %v4000_v44 = vpop.permute.xlu1 %3999 }
0x1095   :  { %v4002_v45 = vmul.f32 %v4000_v44, %v3996_v15 }
0x1097   :  { %4004 = vrot.lane.b32.xlu0 %v4002_v45, %s6600_s27 }
0x1109   :  { %v4005_v48 = vpop.permute.xlu0 %4004 }
0x110a   :  { %v4007_v52 = vadd.f32 %v4005_v48, %v3997_v46 }
0x110c   :  { %6509 = vtanh.f32 %v4007_v52 }
0x1116   :  { %v6510_v53 = vpop.eup %6509 }
0x1117   :  { %4010 = vrot.lane.b32.xlu1 %v6510_v53, %s6599_s5 }
0x1189   :  { %v4011_v54 = vpop.permute.xlu1 %4010 }
0x118a   :  { %v7201_v41 = vmul.f32 %v4011_v54, %v3996_v15 }
0x118c   :  { %4026 = vrot.lane.b32.xlu0 %v7201_v41, %s6600_s27 }
0x11fe   :  { %v4027_v55 = vpop.permute.xlu0 %4026 }
0x11ff   :  { %v4028_v58 = vsel %vm57_vm0, %v4027_v55, 0 }
0x1200   :  { %v4099_v59 = vand.u32 4294901760, %v4028_v58 }
0x1202   :  { %v4100_v61 = vsub.f32 %v4028_v58, %v4099_v59 }
0x1204   :  { %v4101_v62 = vand.u32 4294901760, %v4100_v61 }
0x1206   :  { %v4102_v0 = vsub.f32 %v4100_v61, %v4101_v62 }
0x1208   :  { %v4103_v1 = vand.u32 4294901760, %v4102_v0 }
0x120a   :  { %5909 = vmatmul.mubr.f32.vlgmr.msra.gmra.mrb[12].mxu0 %v4103_v1 }
0x120b   :  { %6280 = vmatpush3.bf16.msra.mxu0 %v6801_v26  ;;  %5919 = vmatprep.mubr.msk.f32.mxu0 %vm6597_vm2, %v6598_v20 }
0x120c   :  { %6281 = vmatprep.subr.bf16.mxu0 %v6596_v4 }
0x120f   :  { %6283 = vmatpush3.bf16.msra.mxu0 %v6830_v3 }
0x1210   :  { %6284 = vmatprep.subr.bf16.mxu0 %v6596_v4 }
0x1212   :  { %5920 = vmatmul.mubr.f32.vlgmr.msra.gmra.mrb[12].mxu0 %v4099_v59 }
0x1213   :  { %6286 = vmatpush3.bf16.msra.mxu0 %v6839_v12  ;;  %5930 = vmatprep.mubr.msk.f32.mxu0 %vm6597_vm2, %v6598_v20 }
0x1214   :  { %6287 = vmatprep.subr.bf16.mxu0 %v6596_v4 }
0x1217   :  { %6289 = vmatpush3.bf16.msra.mxu0 %v6846_v30 }
0x1218   :  { %6290 = vmatprep.subr.bf16.mxu0 %v6596_v4 }
0x121a   :  { %5931 = vmatmul.mubr.f32.vlgmr.msra.gmra.mrb[12].mxu0 %v4100_v61 }
0x121b   :  { %6292 = vmatpush3.bf16.msra.mxu0 %v6692_v23  ;;  %5941 = vmatprep.mubr.msk.f32.mxu0 %vm6597_vm2, %v6598_v20 }
0x121c   :  { %6293 = vmatprep.subr.bf16.mxu0 %v6596_v4 }
0x121f   :  { %6295 = vmatpush3.bf16.msra.mxu0 %v6712_v33 }
0x1220   :  { %6296 = vmatprep.subr.bf16.mxu0 %v6596_v4 }
0x1222   :  { %5942 = vmatmul.mubr.f32.vlgmr.msra.gmra.mrb[12].mxu0 %v4101_v62 }
0x1223   :  { %6298 = vmatpush3.bf16.msra.mxu0 %v6870_v22  ;;  %5952 = vmatprep.mubr.msk.f32.mxu0 %vm6597_vm2, %v6598_v20 }
0x1224   :  { %6299 = vmatprep.subr.bf16.mxu0 %v6596_v4 }
0x1227   :  { %6301 = vmatpush3.bf16.msra.mxu0 %v6880_v31 }
0x1228   :  { %6302 = vmatprep.subr.bf16.mxu0 %v6596_v4 }
0x122a   :  { %5953 = vmatmul.mubr.f32.vlgmr.msra.gmra.mrb[12].mxu0 %v4099_v59 }
0x122b   :  { %6304 = vmatpush3.bf16.msra.mxu0 %v6692_v23  ;;  %5963 = vmatprep.mubr.msk.f32.mxu0 %vm6597_vm2, %v6598_v20 }
0x122c   :  { %6305 = vmatprep.subr.bf16.mxu0 %v6596_v4 }
0x122f   :  { %6307 = vmatpush3.bf16.msra.mxu0 %v6712_v33 }
0x1232   :  { %5964 = vmatmul.mubr.f32.vlgmr.msra.gmra.mrb[12].mxu0 %v4099_v59 }
0x1305   :  { %v4511_v2 = vpop.f32.mrb[12].mxu0 }
0x1306   :  { %v4515_v6 = vadd.f32 %v6970_v57, %v4511_v2  ;;  %v5965_v8 = vpop.f32.mrb[13].mxu0 }
0x1308   :  { %6511 = vtanh.f32 %v4515_v6 }
0x1312   :  { %v6512_v9 = vpop.eup %6511 }
0x1313   :  { %4521 = vrot.lane.b32.xlu1 %v6512_v9, %s6599_s5  ;;  %v4517_v13 = vmul.f32 0.5, %v6512_v9 }
0x1315   :  { %v4518_v16 = vadd.f32 0.5, %v4517_v13 }
0x1317   :  { %v4519_v19 = vmul.f32 %v4518_v16, %v4007_v52 }
0x1385   :  { %v4522_v17 = vpop.permute.xlu1 %4521 }
0x1386   :  { %v4524_v18 = vmul.f32 %v4522_v17, %v4518_v16 }
0x1388   :  { %4526 = vrot.lane.b32.xlu0 %v4524_v18, %s6600_s27 }
0x13fa   :  { %v4527_v24 = vpop.permute.xlu0 %4526 }
0x13fb   :  { %v7238_v27 = vadd.f32 %v4527_v24, %v4519_v19 }
0x13fd   :  { %6513 = vtanh.f32 %v7238_v27 }
0x1407   :  { %v6514_v28 = vpop.eup %6513 }
0x1408   :  { %4532 = vrot.lane.b32.xlu1 %v6514_v28, %s6599_s5 }
0x147a   :  { %v4533_v57 = vpop.permute.xlu1 %4532 }
0x147b   :  { %v7242_v29 = vmul.f32 %v4533_v57, %v4518_v16 }
0x147d   :  { %4548 = vrot.lane.b32.xlu0 %v7242_v29, %s6600_s27 }
0x14ef   :  { %v4549_v32 = vpop.permute.xlu0 %4548 }
0x14f0   :  { %v4550_v36 = vsel %vm57_vm0, %v4549_v32, 0 }
0x14f1   :  { %v4621_v39 = vand.u32 4294901760, %v4550_v36 }
0x14f3   :  { %v4622_v47 = vsub.f32 %v4550_v36, %v4621_v39 }
0x14f5   :  { %v4623_v50 = vand.u32 4294901760, %v4622_v47 }
0x14f7   :  { %v4624_v56 = vsub.f32 %v4622_v47, %v4623_v50 }
0x14f9   :  { %v4625_v60 = vand.u32 4294901760, %v4624_v56 }
0x14fb   :  { %5975 = vmatmul.mubr.f32.vlgmr.msra.gmra.mrb[8].mxu1 %v4625_v60 }
0x14fc   :  { %6316 = vmatpush3.bf16.msra.mxu1 %v6801_v26  ;;  %5985 = vmatprep.mubr.msk.f32.mxu1 %vm6597_vm2, %v6598_v20 }
0x14fd   :  { %6317 = vmatprep.subr.bf16.mxu1 %v6596_v4 }
0x1500   :  { %6319 = vmatpush3.bf16.msra.mxu1 %v6830_v3 }
0x1501   :  { %6320 = vmatprep.subr.bf16.mxu1 %v6596_v4 }
0x1503   :  { %5986 = vmatmul.mubr.f32.vlgmr.msra.gmra.mrb[8].mxu1 %v4621_v39 }
0x1504   :  { %6322 = vmatpush3.bf16.msra.mxu1 %v6839_v12  ;;  %5996 = vmatprep.mubr.msk.f32.mxu1 %vm6597_vm2, %v6598_v20 }
0x1505   :  { %6323 = vmatprep.subr.bf16.mxu1 %v6596_v4 }
0x1508   :  { %6325 = vmatpush3.bf16.msra.mxu1 %v6846_v30  ;;  %v881_v30 = vld [vmem:[%s7310_s1] sm:$0xff]  ;;  %s6602_s1 = smov 96  }
0x1509   :  { %6326 = vmatprep.subr.bf16.mxu1 %v6596_v4 }
0x150b   :  { %5997 = vmatmul.mubr.f32.vlgmr.msra.gmra.mrb[8].mxu1 %v4622_v47 }
0x150c   :  { %6328 = vmatpush3.bf16.msra.mxu1 %v6692_v23  ;;  %6007 = vmatprep.mubr.msk.f32.mxu1 %vm6597_vm2, %v6598_v20 }
0x150d   :  { %6329 = vmatprep.subr.bf16.mxu1 %v6596_v4 }
0x1510   :  { %6331 = vmatpush3.bf16.msra.mxu1 %v6712_v33 }
0x1511   :  { %6332 = vmatprep.subr.bf16.mxu1 %v6596_v4 }
0x1513   :  { %6008 = vmatmul.mubr.f32.vlgmr.msra.gmra.mrb[8].mxu1 %v4623_v50 }
0x1514   :  { %6334 = vmatpush3.bf16.msra.mxu1 %v6870_v22  ;;  %6018 = vmatprep.mubr.msk.f32.mxu1 %vm6597_vm2, %v6598_v20  ;;  %v6601_v22 = vmov 0  }
0x1515   :  { %6335 = vmatprep.subr.bf16.mxu1 %v6596_v4  ;;  %6486 = vset.pattern.permute.xlu0 %v6601_v22 }
0x1516   :  { %6485 = vset.pattern.permute.xlu1 %v6601_v22 }
0x1518   :  { %6337 = vmatpush3.bf16.msra.mxu1 %v6880_v31 }
0x1519   :  { %6338 = vmatprep.subr.bf16.mxu1 %v6596_v4 }
0x151b   :  { %6019 = vmatmul.mubr.f32.vlgmr.msra.gmra.mrb[8].mxu1 %v4621_v39 }
0x151c   :  { %6340 = vmatpush3.bf16.msra.mxu1 %v6692_v23  ;;  %6029 = vmatprep.mubr.msk.f32.mxu1 %vm6597_vm2, %v6598_v20  ;;  %v5107_v23 = vadd.s32 4294967295, %v881_v30 }
0x151d   :  { %6341 = vmatprep.subr.bf16.mxu1 %v6596_v4 }
0x151e   :  { %vm1928_vm3 = vcmp.eq.s32.totalorder %v5107_v23, 1  ;;  %vm3494_vm4 = vcmp.eq.s32.totalorder %v5107_v23, 4  ;;  %vm4538_vm5 = vcmp.eq.s32.totalorder %v5107_v23, 6  ;;  %vm1402_vm6 = vcmp.eq.s32.totalorder %v5107_v23, 0 }
0x151f   :  { %v1929_v20 = vsel %vm1928_vm3, 1, %v6601_v22  ;;  %v3495_v4 = vsel %vm3494_vm4, 1, %v6601_v22  ;;  %vm2450_vm7 = vcmp.eq.s32.totalorder %v5107_v23, 2  ;;  %vm2972_vm8 = vcmp.eq.s32.totalorder %v5107_v23, 3 }
0x1520   :  { %6343 = vmatpush3.bf16.msra.mxu1 %v6712_v33  ;;  %v4539_v33 = vsel %vm4538_vm5, 1, %v6601_v22  ;;  %v2451_v63 = vsel %vm2450_vm7, 1, %v6601_v22  ;;  %v2973_v5 = vsel %vm2972_vm8, 1, %v6601_v22  ;;  %vm4016_vm9 = vcmp.eq.s32.totalorder %v5107_v23, 5 }
0x1521   :  { %v4017_v7 = vsel %vm4016_vm9, 1, %v6601_v22  ;;  %vm5060_vm10 = vcmp.eq.s32.totalorder %v5107_v23, 7 }
0x1522   :  { %v5061_v10 = vsel %vm5060_vm10, 1, %v6601_v22 }
0x1523   :  { %6030 = vmatmul.mubr.f32.vlgmr.msra.gmra.mrb[8].mxu1 %v4621_v39 }
0x15f6   :  { %v5033_v26 = vpop.f32.mrb[8].mxu1 }
0x15f7   :  { %v5037_v3 = vadd.f32 %v6968_v51, %v5033_v26  ;;  %v6031_v12 = vpop.f32.mrb[9].mxu1  ;;  %v1403_v51 = vsel %vm1402_vm6, 1, %v6601_v22 }
0x15f9   :  { %6515 = vtanh.f32 %v5037_v3 }
0x1603   :  { %v6516_v31 = vpop.eup %6515 }
0x1604   :  { %5043 = vrot.lane.b32.xlu1 %v6516_v31, %s6599_s5  ;;  %v5039_v11 = vmul.f32 0.5, %v6516_v31 }
0x1606   :  { %v5040_v21 = vadd.f32 0.5, %v5039_v11 }
0x1608   :  { %1405 = vperm.xlu1 %6485, %v1403_v51   ;;  %v5041_v38 = vmul.f32 %v5040_v21, %v7238_v27 }
0x160c   :  { %2453 = vperm.xlu1 %6485, %v2451_v63  }
0x1610   :  { %2975 = vperm.xlu1 %6485, %v2973_v5  }
0x1614   :  { %4019 = vperm.xlu1 %6485, %v4017_v7  }
0x1618   :  { %5063 = vperm.xlu1 %6485, %v5061_v10  }
0x1676   :  { %v5044_v14 = vpop.permute.xlu1 %5043 }
0x1677   :  { %v5046_v25 = vmul.f32 %v5044_v14, %v5040_v21 }
0x1679   :  { %5048 = vrot.lane.b32.xlu0 %v5046_v25, %s6600_s27 }
0x167d   :  { %1931 = vperm.xlu0 %6486, %v1929_v20  }
0x1681   :  { %3497 = vperm.xlu0 %6486, %v3495_v4  }
0x1685   :  { %4541 = vperm.xlu0 %6486, %v4539_v33  }
0x1687   :  { %v1406_v48 = vpop.permute.xlu1 %1405 }
0x1688   :  { %vm1407_vm11 = vcmp.eq.s32.totalorder %v1406_v48, 1 }
0x1689   :  { %1409 = vrot.lane.b32.xlu0 %v885_v35, %s6602_s1 }
0x168b   :  { %v2454_v53 = vpop.permute.xlu1 %2453 }
0x168c   :  { %vm2455_vm13 = vcmp.eq.s32.totalorder %v2454_v53, 1 }
0x168f   :  { %v2976_v55 = vpop.permute.xlu1 %2975 }
0x1690   :  { %vm2977_vm14 = vcmp.eq.s32.totalorder %v2976_v55, 1 }
0x1693   :  { %v4020_v61 = vpop.permute.xlu1 %4019 }
0x1694   :  { %vm4021_vm1 = vcmp.eq.s32.totalorder %v4020_v61, 1 }
0x1697   :  { %v5064_v1 = vpop.permute.xlu1 %5063 }
0x1698   :  { %vm5065_vm3 = vcmp.eq.s32.totalorder %v5064_v1, 1 }
0x16eb   :  { %v5049_v40 = vpop.permute.xlu0 %5048 }
0x16ec   :  { %v5051_v15 = vadd.f32 %v5049_v40, %v5041_v38 }
0x16ee   :  { %6517 = vtanh.f32 %v5051_v15 }
0x16f8   :  { %v6518_v44 = vpop.eup %6517 }
0x16f9   :  { %5054 = vrot.lane.b32.xlu1 %v6518_v44, %s6599_s5 }
0x16fc   :  { %v1932_v45 = vpop.permute.xlu0 %1931 }
0x16fd   :  { %5073 = vrot.lane.b32.xlu1 %v5051_v15, %s6602_s1  ;;  %vm1933_vm12 = vcmp.eq.s32.totalorder %v1932_v45, 1 }
0x1700   :  { %v3498_v46 = vpop.permute.xlu0 %3497 }
0x1701   :  { %vm3499_vm15 = vcmp.eq.s32.totalorder %v3498_v46, 1 }
0x1704   :  { %v4542_v52 = vpop.permute.xlu0 %4541 }
0x1705   :  { %vm4543_vm2 = vcmp.eq.s32.totalorder %v4542_v52, 1 }
0x1708   :  { %v1410_v54 = vpop.permute.xlu0 %1409 }
0x1709   :  { %v1412_v58 = vsel %vm1407_vm11, %v6976_v42, %v1410_v54 }
0x170a   :  { %v1934_v59 = vsel %vm1933_vm12, %v7021_v43, %v1412_v58 }
0x170b   :  { %v2456_v62 = vsel %vm2455_vm13, %v7066_v37, %v1934_v59 }
0x170c   :  { %v2978_v0 = vsel %vm2977_vm14, %v7111_v34, %v2456_v62 }
0x170d   :  { %v3500_v2 = vsel %vm3499_vm15, %v7156_v49, %v2978_v0 }
0x170e   :  { %v4022_v9 = vsel %vm4021_vm1, %v7201_v41, %v3500_v2 }
0x170f   :  { %v4544_v43 = vsel %vm4543_vm2, %v7242_v29, %v4022_v9 }
0x176b   :  { %v5055_v6 = vpop.permute.xlu1 %5054 }
0x176c   :  { %v5057_v8 = vmul.f32 %v5055_v6, %v5040_v21 }
0x176e   :  { %5068 = vrot.lane.b32.xlu0 %v5057_v8, %s6600_s27  ;;  %v5066_v37 = vsel %vm5065_vm3, %v5057_v8, %v4544_v43 }
0x176f   :  { %v5074_v42 = vpop.permute.xlu1 %5073 }
0x1770   :  { %5076 = vst.msk [vmem:[#allocation3] sm:$0xff] %vm57_vm0, %v5074_v42 }
0x1772   :  { %5078 = vrot.lane.b32.xlu0 %v5066_v37, %s6600_s27 }
0x17e0   :  { %v5069_v34 = vpop.permute.xlu0 %5068 }
0x17e1   :  { %5071 = vst.msk [vmem:[#allocation2] sm:$0xff] %vm57_vm0, %v5069_v34 }
0x17e4   :  { %v5079_v49 = vpop.permute.xlu0 %5078 }
0x17e5   :  { %5081 = vst.msk [vmem:[#allocation4] sm:$0xff] %vm57_vm0, %v5079_v49 }
0x17e6 PF:  { %s6603_s30 = smov [#allocation12]  }
0x17e7   :  { %s5094_s7 = sshll.u32 %s6603_s30, 4  ;;  %s5095_s7 = int_to_ptr.vmem [resolvable:$true] %s5094_s7 }
0x17e8   :  { %s6563_s8 = scalar_lea.vmem %s5095_s7, 128  ;;  %p6568_p4 = scmp.lt.s32.totalorder %s5095_s7, %s5095_s7 }
0x17e9   :  { %p6564_p3 = scmp.ne.s32.totalorder %s5095_s7, %s6563_s8  ;;  %p6569_p5 = scmp.lt.s32.totalorder %s6563_s8, %s6563_s8 }
0x17eb   :  { %p6570_p6 = por %p6569_p5, %p6568_p4 }
0x17ec   :  { %v5085_v13 = vld [vmem:[#allocation4] sm:$0xff] }
0x17ed   :  { %5087 = vst.msk [vmem:[#allocation12] sm:$0xff] %vm57_vm0, %v5085_v13  ;;  %p6571_p7 = pnand %p6570_p6, %p6564_p3 }
0x17ef   :  { %6574 = shalt.err (!%p6571_p7)
}
0x17f0   :  { %s6575_s11 = scalar_lea.hbm %s7315_s6, 128 }
0x17f1   :  { %p6576_p8 = scmp.ne.s32.totalorder %s7315_s6, %s6575_s11  ;;  %p6579_p9 = scmp.lt.u32.totalorder %s6575_s11, %s7315_s6 }
0x17f3   :  { %p6581_p10 = pnand %p6579_p9, %p6576_p8 }
0x17f5   :  { %6584 = shalt.err (!%p6581_p10)
}
0x17f6   :  { %5097 = dma.vmem_to_hbm [thread:$0]  %s5095_s7, 128, %s7315_s6, [#allocation9]  }
0x17f7   :  { %6589 = dma.done.wait [#allocation9], 128  }
0x17f8   :  { %6590 = vsyncadd [#allocation9], 4294967168 }
0x17f9   :  { %5101 = vsyncpa [#allocation8], 1 }
0x17fa   :  { %5102 = vsyncpa [#allocation11], 1 }
0x17fb   :  { %5103 = vsyncpa [#allocation9], 1 }

</bundles_post_ra>
